<compile_context>
chip_gen: v7x
topology: tpu7x:2x2x1
jax: 0.10.0
libtpu: 0.0.40
codegen_flags: <defaults>
</compile_context>

<pallas_src>
import jax
import jax.numpy as jnp
from jax import lax
from jax.experimental import pallas as pl
from jax.experimental.pallas import tpu as pltpu

BN_EPS = 1e-5


def _mosaic_params(tile_bytes, n_grid_axes=1):
    """Parallel grid semantics + an explicit, generation-safe VMEM budget."""
    limit = int(min(max(2 * int(tile_bytes) + (16 << 20), 32 << 20), 48 << 20))
    return pltpu.CompilerParams(
        dimension_semantics=("parallel",) * n_grid_axes,
        vmem_limit_bytes=limit)


# --------------------------------------------------------------------------
# Kernel A: fused conv1 (1x1) + expansion conv (1x1); x (NCHW) is read once.
# Emits raw y1 (bf16), raw ye (bf16) and per-image partial BN stats.
# --------------------------------------------------------------------------
def dual_conv1x1_stats_kernel(x_ref, w1_ref, we_ref,
                              y1_ref, ye_ref, s1_ref, q1_ref, se_ref, qe_ref):
    x = x_ref[0].astype(jnp.bfloat16)                       # (Cin, HW), NCHW slab as-is
    y1 = jnp.dot(w1_ref[...], x, preferred_element_type=jnp.float32)   # (C1, HW)
    ye = jnp.dot(we_ref[...], x, preferred_element_type=jnp.float32)   # (C2, HW)

    y1b = y1.astype(jnp.bfloat16)                           # bf16 HBM storage
    yeb = ye.astype(jnp.bfloat16)
    y1_ref[0] = y1b
    ye_ref[0] = yeb

    y1f = y1b.astype(jnp.float32)                           # stats over stored values
    yef = yeb.astype(jnp.float32)
    s1_ref[0] = jnp.sum(y1f, axis=1, keepdims=True)
    q1_ref[0] = jnp.sum(y1f * y1f, axis=1, keepdims=True)
    se_ref[0] = jnp.sum(yef, axis=1, keepdims=True)
    qe_ref[0] = jnp.sum(yef * yef, axis=1, keepdims=True)


def fused_conv1_conve(x, w1, we):
    n, cin, hw = x.shape
    c1 = w1.shape[0]
    c2 = we.shape[0]
    tile_bytes = hw * (cin * 4 + (c1 + c2) * 2 + (c1 + c2) * 4) + (c1 + c2) * cin * 2
    return pl.pallas_call(
        dual_conv1x1_stats_kernel,
        out_shape=(jax.ShapeDtypeStruct((n, c1, hw), jnp.bfloat16),
                   jax.ShapeDtypeStruct((n, c2, hw), jnp.bfloat16),
                   jax.ShapeDtypeStruct((n, c1, 1), jnp.float32),
                   jax.ShapeDtypeStruct((n, c1, 1), jnp.float32),
                   jax.ShapeDtypeStruct((n, c2, 1), jnp.float32),
                   jax.ShapeDtypeStruct((n, c2, 1), jnp.float32)),
        grid=(n,),
        in_specs=[pl.BlockSpec((1, cin, hw), lambda i: (i, 0, 0)),
                  pl.BlockSpec((c1, cin), lambda i: (0, 0)),
                  pl.BlockSpec((c2, cin), lambda i: (0, 0))],
        out_specs=(pl.BlockSpec((1, c1, hw), lambda i: (i, 0, 0)),
                   pl.BlockSpec((1, c2, hw), lambda i: (i, 0, 0)),
                   pl.BlockSpec((1, c1, 1), lambda i: (i, 0, 0)),
                   pl.BlockSpec((1, c1, 1), lambda i: (i, 0, 0)),
                   pl.BlockSpec((1, c2, 1), lambda i: (i, 0, 0)),
                   pl.BlockSpec((1, c2, 1), lambda i: (i, 0, 0))),
        compiler_params=_mosaic_params(tile_bytes),
    )(x, w1, we)


# --------------------------------------------------------------------------
# Kernel B: 3x3 conv (padding=1) with fused BN1-affine + ReLU prologue.
# One grid step = one image.  Zero padding is built once (lane-aligned pad of
# the flattened HW axis); the 9 taps are lane-shifted slices of that buffer,
# grouped per kernel row into 3 deeper-K matmuls (K = 3*C_in).
# --------------------------------------------------------------------------
def make_conv3x3_kernel(img_w, c_in, c_out):
    pad = ((img_w + 1 + 127) // 128) * 128     # lane-aligned zero pad >= img_w + 1

    def kernel(y1_ref, sc_ref, sh_ref, w_ref, y2_ref, s_ref, q_ref):
        # fused BN1 affine + ReLU on the raw conv1 output; single bf16 cast
        # hoisted out of the tap loop.
        a = jnp.maximum(
            y1_ref[0].astype(jnp.float32) * sc_ref[...] + sh_ref[...], 0.0)
        ab = a.astype(jnp.bfloat16)                          # (C_in, HW)
        hw = ab.shape[1]

        zeros = jnp.zeros((c_in, pad), jnp.bfloat16)
        apad = jnp.concatenate([zeros, ab, zeros], axis=1)   # rows above/below image read 0
        col = lax.broadcasted_iota(jnp.int32, (1, hw), 1) % img_w
        not_left = col > 0                  # dw = -1 must not wrap to previous row
        not_right = col < img_w - 1         # dw = +1 must not wrap to next row

        acc = jnp.zeros((c_out, hw), jnp.float32)
        for g, dh in enumerate((-1, 0, 1)):
            slabs = []
            for dw in (-1, 0, 1):
                start = pad + dh * img_w + dw
                s = lax.slice_in_dim(apad, start, start + hw, axis=1)
                if dw == -1:
                    s = jnp.where(not_left, s, 0)
                elif dw == 1:
                    s = jnp.where(not_right, s, 0)
                slabs.append(s)
            # one kernel row = one deeper-K matmul (K = 3*C_in)
            acc = acc + jnp.dot(w_ref[g], jnp.concatenate(slabs, axis=0),
                                preferred_element_type=jnp.float32)

        y2b = acc.astype(jnp.bfloat16)                       # bf16 HBM storage
        y2_ref[0] = y2b
        y2f = y2b.astype(jnp.float32)
        s_ref[0] = jnp.sum(y2f, axis=1, keepdims=True)
        q_ref[0] = jnp.sum(y2f * y2f, axis=1, keepdims=True)

    return kernel


def conv3x3_fused(y1, sc1, sh1, w2, img_w):
    n, c_in, hw = y1.shape
    c_out = w2.shape[1]
    # TODO(synk): for very large spatial planes, tile HW (with a one-row halo)
    #             inside this kernel so the per-image live set also fits
    #             v7x's 64 MiB VMEM.
    kernel = make_conv3x3_kernel(img_w, c_in, c_out)
    tile_bytes = hw * (c_in * 2 + c_out * 2 + c_in * 8 + c_out * 4) + 9 * c_in * c_out * 2
    return pl.pallas_call(
        kernel,
        out_shape=(jax.ShapeDtypeStruct((n, c_out, hw), jnp.bfloat16),
                   jax.ShapeDtypeStruct((n, c_out, 1), jnp.float32),
                   jax.ShapeDtypeStruct((n, c_out, 1), jnp.float32)),
        grid=(n,),
        in_specs=[pl.BlockSpec((1, c_in, hw), lambda i: (i, 0, 0)),
                  pl.BlockSpec((c_in, 1), lambda i: (0, 0)),
                  pl.BlockSpec((c_in, 1), lambda i: (0, 0)),
                  pl.BlockSpec((3, c_out, 3 * c_in), lambda i: (0, 0, 0))],
        out_specs=(pl.BlockSpec((1, c_out, hw), lambda i: (i, 0, 0)),
                   pl.BlockSpec((1, c_out, 1), lambda i: (i, 0, 0)),
                   pl.BlockSpec((1, c_out, 1), lambda i: (i, 0, 0))),
        compiler_params=_mosaic_params(tile_bytes),
    )(y1, sc1, sh1, w2)


# --------------------------------------------------------------------------
# Kernel C: conv3 (1x1) with fused BN2-affine + ReLU prologue + stats.
# --------------------------------------------------------------------------
def conv1x1_affine_stats_kernel(y_ref, sc_ref, sh_ref, w_ref, o_ref, s_ref, q_ref):
    a = jnp.maximum(
        y_ref[0].astype(jnp.float32) * sc_ref[...] + sh_ref[...], 0.0)
    y = jnp.dot(w_ref[...], a.astype(jnp.bfloat16),
                preferred_element_type=jnp.float32)          # (C2, HW)
    yb = y.astype(jnp.bfloat16)                              # bf16 HBM storage
    o_ref[0] = yb
    yf = yb.astype(jnp.float32)
    s_ref[0] = jnp.sum(yf, axis=1, keepdims=True)
    q_ref[0] = jnp.sum(yf * yf, axis=1, keepdims=True)


def conv1x1_fused(y, sc, sh, w):
    n, c_in, hw = y.shape
    c_out = w.shape[0]
    tile_bytes = hw * (c_in * 2 + c_out * 2 + c_in * 4 + c_out * 4) + c_in * c_out * 2
    return pl.pallas_call(
        conv1x1_affine_stats_kernel,
        out_shape=(jax.ShapeDtypeStruct((n, c_out, hw), jnp.bfloat16),
                   jax.ShapeDtypeStruct((n, c_out, 1), jnp.float32),
                   jax.ShapeDtypeStruct((n, c_out, 1), jnp.float32)),
        grid=(n,),
        in_specs=[pl.BlockSpec((1, c_in, hw), lambda i: (i, 0, 0)),
                  pl.BlockSpec((c_in, 1), lambda i: (0, 0)),
                  pl.BlockSpec((c_in, 1), lambda i: (0, 0)),
                  pl.BlockSpec((c_out, c_in), lambda i: (0, 0))],
        out_specs=(pl.BlockSpec((1, c_out, hw), lambda i: (i, 0, 0)),
                   pl.BlockSpec((1, c_out, 1), lambda i: (i, 0, 0)),
                   pl.BlockSpec((1, c_out, 1), lambda i: (i, 0, 0))),
        compiler_params=_mosaic_params(tile_bytes),
    )(y, sc, sh, w)


# --------------------------------------------------------------------------
# Kernel D: BN3(main) + BN(identity) + residual add + ReLU.  Output is written
# directly in NCHW layout (no XLA transpose pass afterwards).
# --------------------------------------------------------------------------
def residual_kernel(y_ref, s3_ref, b3_ref, e_ref, se_ref, be_ref, o_ref):
    main = y_ref[0].astype(jnp.float32) * s3_ref[...] + b3_ref[...]
    ident = e_ref[0].astype(jnp.float32) * se_ref[...] + be_ref[...]
    o_ref[0] = jnp.maximum(main + ident, 0.0)


def residual_add_relu(y3, sc3, sh3, ye, sce, she):
    n, c, hw = y3.shape
    tile_bytes = hw * c * (2 + 2 + 4)
    mat = pl.BlockSpec((1, c, hw), lambda i: (i, 0, 0))
    vec = pl.BlockSpec((c, 1), lambda i: (0, 0))
    return pl.pallas_call(
        residual_kernel,
        out_shape=jax.ShapeDtypeStruct((n, c, hw), jnp.float32),
        grid=(n,),
        in_specs=[mat, vec, vec, mat, vec, vec],
        out_specs=mat,
        compiler_params=_mosaic_params(tile_bytes),
    )(y3, sc3, sh3, ye, sce, she)


# --------------------------------------------------------------------------
# Glue (plain JAX): BN stat folding, weight layout, forward orchestration.
# --------------------------------------------------------------------------
def fold_bn(psum, pssq, n_per_block, gamma, beta, eps=BN_EPS):
    """Per-image partial sums (N, C, 1) -> per-channel scale & shift (C, 1).

    Uses a Chan-style parallel combine (per-block centering) which is more
    numerically robust than a single global E[x^2] - mean^2.
    """
    nb = psum.shape[0]
    cnt = nb * n_per_block
    mean_b = psum / n_per_block                               # (N, C, 1)
    m2_b = jnp.maximum(pssq - psum * mean_b, 0.0)             # per-block centered ssq
    mean = jnp.sum(psum, axis=0) / cnt                        # (C, 1)
    m2 = jnp.sum(m2_b, axis=0) + n_per_block * jnp.sum((mean_b - mean) ** 2, axis=0)
    var = jnp.maximum(m2 / cnt, 0.0)                          # biased variance
    scale = gamma.reshape(-1, 1) / jnp.sqrt(var + eps)        # (C, 1)
    shift = beta.reshape(-1, 1) - mean * scale
    return scale, shift


def w_1x1(w_oihw):            # (O, I, 1, 1) -> (O, I) bf16 (native layout)
    return w_oihw[:, :, 0, 0].astype(jnp.bfloat16)


def w_3x3_rows(w_oihw):       # (O, I, 3, 3) -> (3, O, 3*I) bf16, group = kernel row kh
    o, i = w_oihw.shape[0], w_oihw.shape[1]
    return jnp.transpose(w_oihw, (2, 0, 3, 1)).reshape(3, o, 3 * i).astype(jnp.bfloat16)


def bottleneck_forward(x_nchw, p):
    n, cin, h, w = x_nchw.shape
    hw = h * w
    x = x_nchw.reshape(n, cin, hw)        # NCHW kept as-is (free reshape, no transpose)

    w1 = w_1x1(p["conv1"])                # (c1, cin)
    we = w_1x1(p["conv_e"])               # (c2, cin)
    w2 = w_3x3_rows(p["conv2"])           # (3, c1, 3*c1)
    w3 = w_1x1(p["conv3"])                # (c2, c1)
    c2 = we.shape[0]

    # conv1 + expansion conv (x read once), raw bf16 outputs + partial BN stats
    y1, ye, s1, q1, se, qe = fused_conv1_conve(x, w1, we)
    sc1, sh1 = fold_bn(s1, q1, hw, p["bn1_g"], p["bn1_b"])
    sce, she = fold_bn(se, qe, hw, p["bne_g"], p["bne_b"])

    # conv2 (3x3, pad 1) with fused BN1+ReLU prologue (no HBM im2col)
    y2, s2, q2 = conv3x3_fused(y1, sc1, sh1, w2, w)
    sc2, sh2 = fold_bn(s2, q2, hw, p["bn2_g"], p["bn2_b"])

    # conv3 (1x1) with fused BN2+ReLU prologue
    y3, s3, q3 = conv1x1_fused(y2, sc2, sh2, w3)
    sc3, sh3 = fold_bn(s3, q3, hw, p["bn3_g"], p["bn3_b"])

    # BN3 + BN(identity) + residual add + final ReLU, written straight to NCHW
    out = residual_add_relu(y3, sc3, sh3, ye, sce, she)
    return out.reshape(n, c2, h, w)

    # TODO(synk): strided bottlenecks and the pure-identity (no expansion conv)
    #             shortcut variants are not part of this module and are not
    #             implemented here.


# --------------------------------------------------------------------------
# Reference (mirrors the PyTorch forward in training mode; conv operands and
# the y1/y2/y3/ye intermediates are bf16-rounded exactly as the kernels do,
# so the comparison isolates kernel logic rather than bf16-vs-f32 precision).
# --------------------------------------------------------------------------
def _round_bf16(a):
    return a.astype(jnp.bfloat16).astype(jnp.float32)


def reference_forward(x, p, eps=BN_EPS):
    def conv(a, w, pad):
        return lax.conv_general_dilated(
            _round_bf16(a), _round_bf16(w), (1, 1), [(pad, pad), (pad, pad)],
            dimension_numbers=("NCHW", "OIHW", "NCHW"))

    def bn(y, g, b):
        mean = jnp.mean(y, axis=(0, 2, 3), keepdims=True)
        var = jnp.var(y, axis=(0, 2, 3), keepdims=True)   # biased
        scale = g.reshape(1, -1, 1, 1) / jnp.sqrt(var + eps)
        shift = b.reshape(1, -1, 1, 1) - mean * scale
        return y * scale + shift

    y1 = _round_bf16(conv(x, p["conv1"], 0))
    a1 = jax.nn.relu(bn(y1, p["bn1_g"], p["bn1_b"]))
    y2 = _round_bf16(conv(a1, p["conv2"], 1))
    a2 = jax.nn.relu(bn(y2, p["bn2_g"], p["bn2_b"]))
    y3 = _round_bf16(conv(a2, p["conv3"], 0))
    out = bn(y3, p["bn3_g"], p["bn3_b"])
    ident = bn(_round_bf16(conv(x, p["conv_e"], 0)), p["bne_g"], p["bne_b"])
    return jax.nn.relu(out + ident)


# --------------------------------------------------------------------------
if __name__ == "__main__":
    # Small shapes: N=2, C_in=8, H=W=16, width1=16, width2=32
    N, Cin, H, W = 2, 8, 16, 16
    width1, width2 = 16, 32

    key = jax.random.PRNGKey(0)
    ks = jax.random.split(key, 13)
    params = {
        "conv1": 0.2 * jax.random.normal(ks[0], (width1, Cin, 1, 1), jnp.float32),
        "conv2": 0.2 * jax.random.normal(ks[1], (width1, width1, 3, 3), jnp.float32),
        "conv3": 0.2 * jax.random.normal(ks[2], (width2, width1, 1, 1), jnp.float32),
        "conv_e": 0.2 * jax.random.normal(ks[3], (width2, Cin, 1, 1), jnp.float32),
        "bn1_g": 1.0 + 0.1 * jax.random.normal(ks[4], (width1,), jnp.float32),
        "bn1_b": 0.1 * jax.random.normal(ks[5], (width1,), jnp.float32),
        "bn2_g": 1.0 + 0.1 * jax.random.normal(ks[6], (width1,), jnp.float32),
        "bn2_b": 0.1 * jax.random.normal(ks[7], (width1,), jnp.float32),
        "bn3_g": 1.0 + 0.1 * jax.random.normal(ks[8], (width2,), jnp.float32),
        "bn3_b": 0.1 * jax.random.normal(ks[9], (width2,), jnp.float32),
        "bne_g": 1.0 + 0.1 * jax.random.normal(ks[10], (width2,), jnp.float32),
        "bne_b": 0.1 * jax.random.normal(ks[11], (width2,), jnp.float32),
    }
    x = jax.random.normal(ks[12], (N, Cin, H, W), jnp.float32)

    fwd = jax.jit(bottleneck_forward)
    out = jax.block_until_ready(fwd(x, params))
    ref = jax.block_until_ready(reference_forward(x, params))

    assert out.shape == (N, width2, H, W), out.shape
    max_err = float(jnp.max(jnp.abs(out - ref)))
    # bf16 storage of the intermediates (matched on both sides) leaves only
    # accumulation-order / single-ulp rounding differences.
    assert jnp.allclose(out, ref, rtol=1e-2, atol=2e-2), max_err

    print("KERNEL_OK")
</pallas_src>

<mosaic_0001>
module attributes {stable_mosaic.version = 11 : i64} {
  func.func @dual_conv1x1_stats_kernel(%arg0: i32, %arg1: memref<1x8x256xf32, #tpu.memory_space<vmem>>, %arg2: memref<16x8xbf16, #tpu.memory_space<vmem>>, %arg3: memref<32x8xbf16, #tpu.memory_space<vmem>>, %arg4: memref<1x16x256xbf16, #tpu.memory_space<vmem>>, %arg5: memref<1x32x256xbf16, #tpu.memory_space<vmem>>, %arg6: memref<1x16x1xf32, #tpu.memory_space<vmem>>, %arg7: memref<1x16x1xf32, #tpu.memory_space<vmem>>, %arg8: memref<1x32x1xf32, #tpu.memory_space<vmem>>, %arg9: memref<1x32x1xf32, #tpu.memory_space<vmem>>) attributes {dimension_semantics = [#tpu.dimension_semantics<parallel>], iteration_bounds = array<i64: 2>, scalar_prefetch = 0 : i64, scratch_operands = 0 : i64, tpu.core_type = #tpu.core_type<tc>, window_params = [{transform_indices = @transform_0, window_bounds = array<i64: 1, 8, 256>}, {pipeline_mode = #tpu.pipeline_mode<synchronous>, transform_indices = @transform_1, window_bounds = array<i64: 16, 8>}, {pipeline_mode = #tpu.pipeline_mode<synchronous>, transform_indices = @transform_2, window_bounds = array<i64: 32, 8>}, {transform_indices = @transform_3, window_bounds = array<i64: 1, 16, 256>}, {transform_indices = @transform_4, window_bounds = array<i64: 1, 32, 256>}, {transform_indices = @transform_5, window_bounds = array<i64: 1, 16, 1>}, {transform_indices = @transform_6, window_bounds = array<i64: 1, 16, 1>}, {transform_indices = @transform_7, window_bounds = array<i64: 1, 32, 1>}, {transform_indices = @transform_8, window_bounds = array<i64: 1, 32, 1>}]} {
    %c0 = arith.constant 0 : index
    %c0_0 = arith.constant 0 : index
    %c0_1 = arith.constant 0 : index
    %0 = vector.load %arg1[%c0, %c0_0, %c0_1] : memref<1x8x256xf32, #tpu.memory_space<vmem>>, vector<1x8x256xf32>
    %1 = vector.shape_cast %0 : vector<1x8x256xf32> to vector<8x256xf32>
    %2 = arith.truncf %1 : vector<8x256xf32> to vector<8x256xbf16>
    %c0_2 = arith.constant 0 : index
    %c0_3 = arith.constant 0 : index
    %3 = vector.load %arg2[%c0_2, %c0_3] : memref<16x8xbf16, #tpu.memory_space<vmem>>, vector<16x8xbf16>
    %cst = arith.constant dense<0.000000e+00> : vector<16x256xf32>
    %4 = tpu.matmul %3, %2, %cst {dimension_numbers = #tpu.dot_dimension_numbers<[1], [0], [0], [1], [0, 0, 1, 1], [], []>} : vector<16x8xbf16>, vector<8x256xbf16>, vector<16x256xf32> -> vector<16x256xf32>
    %c0_4 = arith.constant 0 : index
    %c0_5 = arith.constant 0 : index
    %5 = vector.load %arg3[%c0_4, %c0_5] : memref<32x8xbf16, #tpu.memory_space<vmem>>, vector<32x8xbf16>
    %cst_6 = arith.constant dense<0.000000e+00> : vector<32x256xf32>
    %6 = tpu.matmul %5, %2, %cst_6 {dimension_numbers = #tpu.dot_dimension_numbers<[1], [0], [0], [1], [0, 0, 1, 1], [], []>} : vector<32x8xbf16>, vector<8x256xbf16>, vector<32x256xf32> -> vector<32x256xf32>
    %7 = arith.truncf %4 : vector<16x256xf32> to vector<16x256xbf16>
    %8 = arith.truncf %6 : vector<32x256xf32> to vector<32x256xbf16>
    %c0_7 = arith.constant 0 : index
    %c0_8 = arith.constant 0 : index
    %c0_9 = arith.constant 0 : index
    %9 = vector.load %arg4[%c0_7, %c0_8, %c0_9] : memref<1x16x256xbf16, #tpu.memory_space<vmem>>, vector<1x16x256xbf16>
    %10 = vector.shape_cast %9 : vector<1x16x256xbf16> to vector<16x256xbf16>
    %11 = vector.shape_cast %7 : vector<16x256xbf16> to vector<1x16x256xbf16>
    tpu.vector_store %arg4[%c0_7, %c0_8, %c0_9], %11 {strides = array<i32>} : memref<1x16x256xbf16, #tpu.memory_space<vmem>>, vector<1x16x256xbf16>,
    %c0_10 = arith.constant 0 : index
    %c0_11 = arith.constant 0 : index
    %c0_12 = arith.constant 0 : index
    %12 = vector.load %arg5[%c0_10, %c0_11, %c0_12] : memref<1x32x256xbf16, #tpu.memory_space<vmem>>, vector<1x32x256xbf16>
    %13 = vector.shape_cast %12 : vector<1x32x256xbf16> to vector<32x256xbf16>
    %14 = vector.shape_cast %8 : vector<32x256xbf16> to vector<1x32x256xbf16>
    tpu.vector_store %arg5[%c0_10, %c0_11, %c0_12], %14 {strides = array<i32>} : memref<1x32x256xbf16, #tpu.memory_space<vmem>>, vector<1x32x256xbf16>,
    %15 = arith.extf %7 : vector<16x256xbf16> to vector<16x256xf32>
    %16 = arith.extf %8 : vector<32x256xbf16> to vector<32x256xf32>
    %cst_13 = arith.constant dense<0.000000e+00> : vector<16xf32>
    %17 = vector.multi_reduction <add>, %15, %cst_13 [1] : vector<16x256xf32> to vector<16xf32>
    %18 = vector.shape_cast %17 : vector<16xf32> to vector<16x1xf32>
    %c0_14 = arith.constant 0 : index
    %c0_15 = arith.constant 0 : index
    %c0_16 = arith.constant 0 : index
    %19 = vector.load %arg6[%c0_14, %c0_15, %c0_16] : memref<1x16x1xf32, #tpu.memory_space<vmem>>, vector<1x16x1xf32>
    %20 = vector.shape_cast %19 : vector<1x16x1xf32> to vector<16x1xf32>
    %21 = vector.shape_cast %18 : vector<16x1xf32> to vector<1x16x1xf32>
    tpu.vector_store %arg6[%c0_14, %c0_15, %c0_16], %21 {strides = array<i32>} : memref<1x16x1xf32, #tpu.memory_space<vmem>>, vector<1x16x1xf32>,
    %22 = arith.mulf %15, %15 : vector<16x256xf32>
    %cst_17 = arith.constant dense<0.000000e+00> : vector<16xf32>
    %23 = vector.multi_reduction <add>, %22, %cst_17 [1] : vector<16x256xf32> to vector<16xf32>
    %24 = vector.shape_cast %23 : vector<16xf32> to vector<16x1xf32>
    %c0_18 = arith.constant 0 : index
    %c0_19 = arith.constant 0 : index
    %c0_20 = arith.constant 0 : index
    %25 = vector.load %arg7[%c0_18, %c0_19, %c0_20] : memref<1x16x1xf32, #tpu.memory_space<vmem>>, vector<1x16x1xf32>
    %26 = vector.shape_cast %25 : vector<1x16x1xf32> to vector<16x1xf32>
    %27 = vector.shape_cast %24 : vector<16x1xf32> to vector<1x16x1xf32>
    tpu.vector_store %arg7[%c0_18, %c0_19, %c0_20], %27 {strides = array<i32>} : memref<1x16x1xf32, #tpu.memory_space<vmem>>, vector<1x16x1xf32>,
    %cst_21 = arith.constant dense<0.000000e+00> : vector<32xf32>
    %28 = vector.multi_reduction <add>, %16, %cst_21 [1] : vector<32x256xf32> to vector<32xf32>
    %29 = vector.shape_cast %28 : vector<32xf32> to vector<32x1xf32>
    %c0_22 = arith.constant 0 : index
    %c0_23 = arith.constant 0 : index
    %c0_24 = arith.constant 0 : index
    %30 = vector.load %arg8[%c0_22, %c0_23, %c0_24] : memref<1x32x1xf32, #tpu.memory_space<vmem>>, vector<1x32x1xf32>
    %31 = vector.shape_cast %30 : vector<1x32x1xf32> to vector<32x1xf32>
    %32 = vector.shape_cast %29 : vector<32x1xf32> to vector<1x32x1xf32>
    tpu.vector_store %arg8[%c0_22, %c0_23, %c0_24], %32 {strides = array<i32>} : memref<1x32x1xf32, #tpu.memory_space<vmem>>, vector<1x32x1xf32>,
    %33 = arith.mulf %16, %16 : vector<32x256xf32>
    %cst_25 = arith.constant dense<0.000000e+00> : vector<32xf32>
    %34 = vector.multi_reduction <add>, %33, %cst_25 [1] : vector<32x256xf32> to vector<32xf32>
    %35 = vector.shape_cast %34 : vector<32xf32> to vector<32x1xf32>
    %c0_26 = arith.constant 0 : index
    %c0_27 = arith.constant 0 : index
    %c0_28 = arith.constant 0 : index
    %36 = vector.load %arg9[%c0_26, %c0_27, %c0_28] : memref<1x32x1xf32, #tpu.memory_space<vmem>>, vector<1x32x1xf32>
    %37 = vector.shape_cast %36 : vector<1x32x1xf32> to vector<32x1xf32>
    %38 = vector.shape_cast %35 : vector<32x1xf32> to vector<1x32x1xf32>
    tpu.vector_store %arg9[%c0_26, %c0_27, %c0_28], %38 {strides = array<i32>} : memref<1x32x1xf32, #tpu.memory_space<vmem>>, vector<1x32x1xf32>,
    return
  }
  func.func @transform_0(%arg0: i32) -> (i32, i32, i32) {
    %c0_i32 = arith.constant 0 : i32
    %c0_i32_0 = arith.constant 0 : i32
    %c0_i32_1 = arith.constant 0 : i32
    return %arg0, %c0_i32, %c0_i32_0 : i32, i32, i32
  }
  func.func @transform_1(%arg0: i32) -> (i32, i32) {
    %c0_i32 = arith.constant 0 : i32
    %c0_i32_0 = arith.constant 0 : i32
    %c0_i32_1 = arith.constant 0 : i32
    return %c0_i32, %c0_i32_0 : i32, i32
  }
  func.func @transform_2(%arg0: i32) -> (i32, i32) {
    %c0_i32 = arith.constant 0 : i32
    %c0_i32_0 = arith.constant 0 : i32
    %c0_i32_1 = arith.constant 0 : i32
    return %c0_i32, %c0_i32_0 : i32, i32
  }
  func.func @transform_3(%arg0: i32) -> (i32, i32, i32) {
    %c0_i32 = arith.constant 0 : i32
    %c0_i32_0 = arith.constant 0 : i32
    %c0_i32_1 = arith.constant 0 : i32
    return %arg0, %c0_i32, %c0_i32_0 : i32, i32, i32
  }
  func.func @transform_4(%arg0: i32) -> (i32, i32, i32) {
    %c0_i32 = arith.constant 0 : i32
    %c0_i32_0 = arith.constant 0 : i32
    %c0_i32_1 = arith.constant 0 : i32
    return %arg0, %c0_i32, %c0_i32_0 : i32, i32, i32
  }
  func.func @transform_5(%arg0: i32) -> (i32, i32, i32) {
    %c0_i32 = arith.constant 0 : i32
    %c0_i32_0 = arith.constant 0 : i32
    %c0_i32_1 = arith.constant 0 : i32
    return %arg0, %c0_i32, %c0_i32_0 : i32, i32, i32
  }
  func.func @transform_6(%arg0: i32) -> (i32, i32, i32) {
    %c0_i32 = arith.constant 0 : i32
    %c0_i32_0 = arith.constant 0 : i32
    %c0_i32_1 = arith.constant 0 : i32
    return %arg0, %c0_i32, %c0_i32_0 : i32, i32, i32
  }
  func.func @transform_7(%arg0: i32) -> (i32, i32, i32) {
    %c0_i32 = arith.constant 0 : i32
    %c0_i32_0 = arith.constant 0 : i32
    %c0_i32_1 = arith.constant 0 : i32
    return %arg0, %c0_i32, %c0_i32_0 : i32, i32, i32
  }
  func.func @transform_8(%arg0: i32) -> (i32, i32, i32) {
    %c0_i32 = arith.constant 0 : i32
    %c0_i32_0 = arith.constant 0 : i32
    %c0_i32_1 = arith.constant 0 : i32
    return %arg0, %c0_i32, %c0_i32_0 : i32, i32, i32
  }
}

module attributes {stable_mosaic.version = 11 : i64} {
  func.func @kernel(%arg0: i32, %arg1: memref<1x16x256xbf16, #tpu.memory_space<vmem>>, %arg2: memref<16x1xf32, #tpu.memory_space<vmem>>, %arg3: memref<16x1xf32, #tpu.memory_space<vmem>>, %arg4: memref<3x16x48xbf16, #tpu.memory_space<vmem>>, %arg5: memref<1x16x256xbf16, #tpu.memory_space<vmem>>, %arg6: memref<1x16x1xf32, #tpu.memory_space<vmem>>, %arg7: memref<1x16x1xf32, #tpu.memory_space<vmem>>) attributes {dimension_semantics = [#tpu.dimension_semantics<parallel>], iteration_bounds = array<i64: 2>, scalar_prefetch = 0 : i64, scratch_operands = 0 : i64, tpu.core_type = #tpu.core_type<tc>, window_params = [{transform_indices = @transform_0, window_bounds = array<i64: 1, 16, 256>}, {pipeline_mode = #tpu.pipeline_mode<synchronous>, transform_indices = @transform_1, window_bounds = array<i64: 16, 1>}, {pipeline_mode = #tpu.pipeline_mode<synchronous>, transform_indices = @transform_2, window_bounds = array<i64: 16, 1>}, {pipeline_mode = #tpu.pipeline_mode<synchronous>, transform_indices = @transform_3, window_bounds = array<i64: 3, 16, 48>}, {transform_indices = @transform_4, window_bounds = array<i64: 1, 16, 256>}, {transform_indices = @transform_5, window_bounds = array<i64: 1, 16, 1>}, {transform_indices = @transform_6, window_bounds = array<i64: 1, 16, 1>}]} {
    %c0 = arith.constant 0 : index
    %c0_0 = arith.constant 0 : index
    %c0_1 = arith.constant 0 : index
    %0 = vector.load %arg1[%c0, %c0_0, %c0_1] : memref<1x16x256xbf16, #tpu.memory_space<vmem>>, vector<1x16x256xbf16>
    %1 = vector.shape_cast %0 : vector<1x16x256xbf16> to vector<16x256xbf16>
    %2 = arith.extf %1 : vector<16x256xbf16> to vector<16x256xf32>
    %c0_2 = arith.constant 0 : index
    %c0_3 = arith.constant 0 : index
    %3 = vector.load %arg2[%c0_2, %c0_3] : memref<16x1xf32, #tpu.memory_space<vmem>>, vector<16x1xf32>
    %4 = vector.broadcast %3 : vector<16x1xf32> to vector<16x256xf32>
    %5 = arith.mulf %2, %4 : vector<16x256xf32>
    %c0_4 = arith.constant 0 : index
    %c0_5 = arith.constant 0 : index
    %6 = vector.load %arg3[%c0_4, %c0_5] : memref<16x1xf32, #tpu.memory_space<vmem>>, vector<16x1xf32>
    %7 = vector.broadcast %6 : vector<16x1xf32> to vector<16x256xf32>
    %8 = arith.addf %5, %7 : vector<16x256xf32>
    %cst = arith.constant 0.000000e+00 : f32
    %9 = vector.broadcast %cst : f32 to vector<16x256xf32>
    %10 = arith.maximumf %8, %9 : vector<16x256xf32>
    %11 = arith.truncf %10 : vector<16x256xf32> to vector<16x256xbf16>
    %cst_6 = arith.constant 0.000000e+00 : bf16
    %12 = vector.broadcast %cst_6 : bf16 to vector<16x128xbf16>
    %13 = tpu.concatenate %12, %11, %12 in 1 : vector<16x128xbf16>, vector<16x256xbf16>, vector<16x128xbf16> -> vector<16x512xbf16>
    %14 = tpu.iota {dimensions = array<i32: 1>} : vector<1x256xi32>
    %c16_i32 = arith.constant 16 : i32
    %c0_i32 = arith.constant 0 : i32
    %15 = arith.cmpi eq, %c16_i32, %c0_i32 : i32
    %c1_i32 = arith.constant 1 : i32
    %16 = arith.select %15, %c1_i32, %c16_i32 : i32
    %17 = vector.broadcast %16 : i32 to vector<1x256xi32>
    %18 = arith.remsi %14, %17 : vector<1x256xi32>
    %c0_i32_7 = arith.constant 0 : i32
    %19 = vector.broadcast %c0_i32_7 : i32 to vector<1x256xi32>
    %20 = arith.cmpi ne, %18, %19 : vector<1x256xi32>
    %c0_i32_8 = arith.constant 0 : i32
    %21 = vector.broadcast %c0_i32_8 : i32 to vector<1x256xi32>
    %22 = arith.cmpi slt, %18, %21 : vector<1x256xi32>
    %c0_i32_9 = arith.constant 0 : i32
    %23 = arith.cmpi slt, %16, %c0_i32_9 : i32
    %24 = vector.broadcast %23 : i1 to vector<1x256xi1>
    %25 = vector.broadcast %24 : vector<1x256xi1> to vector<1x256xi1>
    %26 = arith.xori %22, %25 : vector<1x256xi1>
    %27 = arith.andi %26, %20 : vector<1x256xi1>
    %28 = vector.broadcast %16 : i32 to vector<1x256xi32>
    %29 = arith.addi %18, %28 : vector<1x256xi32>
    %30 = arith.select %27, %29, %18 : vector<1x256xi1>, vector<1x256xi32>
    %c0_i32_10 = arith.constant 0 : i32
    %31 = vector.broadcast %c0_i32_10 : i32 to vector<1x256xi32>
    %32 = arith.cmpi sgt, %30, %31 : vector<1x256xi32>
    %c15_i32 = arith.constant 15 : i32
    %33 = vector.broadcast %c15_i32 : i32 to vector<1x256xi32>
    %34 = arith.cmpi slt, %30, %33 : vector<1x256xi32>
    %cst_11 = arith.constant 0.000000e+00 : f32
    %35 = vector.broadcast %cst_11 : f32 to vector<16x256xf32>
    %36 = vector.extract_strided_slice %13 {offsets = [0, 111], sizes = [16, 256], strides = [1, 1]} : vector<16x512xbf16> to vector<16x256xbf16>
    %c0_i32_12 = arith.constant 0 : i32
    %37 = arith.sitofp %c0_i32_12 : i32 to bf16
    %38 = vector.shape_cast %32 : vector<1x256xi1> to vector<1x256xi1>
    %39 = vector.broadcast %38 : vector<1x256xi1> to vector<16x256xi1>
    %40 = vector.broadcast %37 : bf16 to vector<16x256xbf16>
    %41 = arith.select %39, %36, %40 : vector<16x256xi1>, vector<16x256xbf16>
    %42 = vector.extract_strided_slice %13 {offsets = [0, 112], sizes = [16, 256], strides = [1, 1]} : vector<16x512xbf16> to vector<16x256xbf16>
    %43 = vector.extract_strided_slice %13 {offsets = [0, 113], sizes = [16, 256], strides = [1, 1]} : vector<16x512xbf16> to vector<16x256xbf16>
    %c0_i32_13 = arith.constant 0 : i32
    %44 = arith.sitofp %c0_i32_13 : i32 to bf16
    %45 = vector.shape_cast %34 : vector<1x256xi1> to vector<1x256xi1>
    %46 = vector.broadcast %45 : vector<1x256xi1> to vector<16x256xi1>
    %47 = vector.broadcast %44 : bf16 to vector<16x256xbf16>
    %48 = arith.select %46, %43, %47 : vector<16x256xi1>, vector<16x256xbf16>
    %c0_14 = arith.constant 0 : index
    %c0_15 = arith.constant 0 : index
    %c0_16 = arith.constant 0 : index
    %49 = vector.load %arg4[%c0_14, %c0_15, %c0_16] : memref<3x16x48xbf16, #tpu.memory_space<vmem>>, vector<1x16x48xbf16>
    %50 = vector.shape_cast %49 : vector<1x16x48xbf16> to vector<16x48xbf16>
    %51 = tpu.concatenate %41, %42, %48 in 0 : vector<16x256xbf16>, vector<16x256xbf16>, vector<16x256xbf16> -> vector<48x256xbf16>
    %cst_17 = arith.constant dense<0.000000e+00> : vector<16x256xf32>
    %52 = tpu.matmul %50, %51, %cst_17 {dimension_numbers = #tpu.dot_dimension_numbers<[1], [0], [0], [1], [0, 0, 1, 1], [], []>} : vector<16x48xbf16>, vector<48x256xbf16>, vector<16x256xf32> -> vector<16x256xf32>
    %53 = arith.addf %35, %52 : vector<16x256xf32>
    %54 = vector.extract_strided_slice %13 {offsets = [0, 127], sizes = [16, 256], strides = [1, 1]} : vector<16x512xbf16> to vector<16x256xbf16>
    %c0_i32_18 = arith.constant 0 : i32
    %55 = arith.sitofp %c0_i32_18 : i32 to bf16
    %56 = vector.shape_cast %32 : vector<1x256xi1> to vector<1x256xi1>
    %57 = vector.broadcast %56 : vector<1x256xi1> to vector<16x256xi1>
    %58 = vector.broadcast %55 : bf16 to vector<16x256xbf16>
    %59 = arith.select %57, %54, %58 : vector<16x256xi1>, vector<16x256xbf16>
    %60 = vector.extract_strided_slice %13 {offsets = [0, 128], sizes = [16, 256], strides = [1, 1]} : vector<16x512xbf16> to vector<16x256xbf16>
    %61 = vector.extract_strided_slice %13 {offsets = [0, 129], sizes = [16, 256], strides = [1, 1]} : vector<16x512xbf16> to vector<16x256xbf16>
    %c0_i32_19 = arith.constant 0 : i32
    %62 = arith.sitofp %c0_i32_19 : i32 to bf16
    %63 = vector.shape_cast %34 : vector<1x256xi1> to vector<1x256xi1>
    %64 = vector.broadcast %63 : vector<1x256xi1> to vector<16x256xi1>
    %65 = vector.broadcast %62 : bf16 to vector<16x256xbf16>
    %66 = arith.select %64, %61, %65 : vector<16x256xi1>, vector<16x256xbf16>
    %c1 = arith.constant 1 : index
    %c0_20 = arith.constant 0 : index
    %c0_21 = arith.constant 0 : index
    %67 = vector.load %arg4[%c1, %c0_20, %c0_21] : memref<3x16x48xbf16, #tpu.memory_space<vmem>>, vector<1x16x48xbf16>
    %68 = vector.shape_cast %67 : vector<1x16x48xbf16> to vector<16x48xbf16>
    %69 = tpu.concatenate %59, %60, %66 in 0 : vector<16x256xbf16>, vector<16x256xbf16>, vector<16x256xbf16> -> vector<48x256xbf16>
    %cst_22 = arith.constant dense<0.000000e+00> : vector<16x256xf32>
    %70 = tpu.matmul %68, %69, %cst_22 {dimension_numbers = #tpu.dot_dimension_numbers<[1], [0], [0], [1], [0, 0, 1, 1], [], []>} : vector<16x48xbf16>, vector<48x256xbf16>, vector<16x256xf32> -> vector<16x256xf32>
    %71 = arith.addf %53, %70 : vector<16x256xf32>
    %72 = vector.extract_strided_slice %13 {offsets = [0, 143], sizes = [16, 256], strides = [1, 1]} : vector<16x512xbf16> to vector<16x256xbf16>
    %c0_i32_23 = arith.constant 0 : i32
    %73 = arith.sitofp %c0_i32_23 : i32 to bf16
    %74 = vector.shape_cast %32 : vector<1x256xi1> to vector<1x256xi1>
    %75 = vector.broadcast %74 : vector<1x256xi1> to vector<16x256xi1>
    %76 = vector.broadcast %73 : bf16 to vector<16x256xbf16>
    %77 = arith.select %75, %72, %76 : vector<16x256xi1>, vector<16x256xbf16>
    %78 = vector.extract_strided_slice %13 {offsets = [0, 144], sizes = [16, 256], strides = [1, 1]} : vector<16x512xbf16> to vector<16x256xbf16>
    %79 = vector.extract_strided_slice %13 {offsets = [0, 145], sizes = [16, 256], strides = [1, 1]} : vector<16x512xbf16> to vector<16x256xbf16>
    %c0_i32_24 = arith.constant 0 : i32
    %80 = arith.sitofp %c0_i32_24 : i32 to bf16
    %81 = vector.shape_cast %34 : vector<1x256xi1> to vector<1x256xi1>
    %82 = vector.broadcast %81 : vector<1x256xi1> to vector<16x256xi1>
    %83 = vector.broadcast %80 : bf16 to vector<16x256xbf16>
    %84 = arith.select %82, %79, %83 : vector<16x256xi1>, vector<16x256xbf16>
    %c2 = arith.constant 2 : index
    %c0_25 = arith.constant 0 : index
    %c0_26 = arith.constant 0 : index
    %85 = vector.load %arg4[%c2, %c0_25, %c0_26] : memref<3x16x48xbf16, #tpu.memory_space<vmem>>, vector<1x16x48xbf16>
    %86 = vector.shape_cast %85 : vector<1x16x48xbf16> to vector<16x48xbf16>
    %87 = tpu.concatenate %77, %78, %84 in 0 : vector<16x256xbf16>, vector<16x256xbf16>, vector<16x256xbf16> -> vector<48x256xbf16>
    %cst_27 = arith.constant dense<0.000000e+00> : vector<16x256xf32>
    %88 = tpu.matmul %86, %87, %cst_27 {dimension_numbers = #tpu.dot_dimension_numbers<[1], [0], [0], [1], [0, 0, 1, 1], [], []>} : vector<16x48xbf16>, vector<48x256xbf16>, vector<16x256xf32> -> vector<16x256xf32>
    %89 = arith.addf %71, %88 : vector<16x256xf32>
    %90 = arith.truncf %89 : vector<16x256xf32> to vector<16x256xbf16>
    %c0_28 = arith.constant 0 : index
    %c0_29 = arith.constant 0 : index
    %c0_30 = arith.constant 0 : index
    %91 = vector.load %arg5[%c0_28, %c0_29, %c0_30] : memref<1x16x256xbf16, #tpu.memory_space<vmem>>, vector<1x16x256xbf16>
    %92 = vector.shape_cast %91 : vector<1x16x256xbf16> to vector<16x256xbf16>
    %93 = vector.shape_cast %90 : vector<16x256xbf16> to vector<1x16x256xbf16>
    tpu.vector_store %arg5[%c0_28, %c0_29, %c0_30], %93 {strides = array<i32>} : memref<1x16x256xbf16, #tpu.memory_space<vmem>>, vector<1x16x256xbf16>,
    %94 = arith.extf %90 : vector<16x256xbf16> to vector<16x256xf32>
    %cst_31 = arith.constant dense<0.000000e+00> : vector<16xf32>
    %95 = vector.multi_reduction <add>, %94, %cst_31 [1] : vector<16x256xf32> to vector<16xf32>
    %96 = vector.shape_cast %95 : vector<16xf32> to vector<16x1xf32>
    %c0_32 = arith.constant 0 : index
    %c0_33 = arith.constant 0 : index
    %c0_34 = arith.constant 0 : index
    %97 = vector.load %arg6[%c0_32, %c0_33, %c0_34] : memref<1x16x1xf32, #tpu.memory_space<vmem>>, vector<1x16x1xf32>
    %98 = vector.shape_cast %97 : vector<1x16x1xf32> to vector<16x1xf32>
    %99 = vector.shape_cast %96 : vector<16x1xf32> to vector<1x16x1xf32>
    tpu.vector_store %arg6[%c0_32, %c0_33, %c0_34], %99 {strides = array<i32>} : memref<1x16x1xf32, #tpu.memory_space<vmem>>, vector<1x16x1xf32>,
    %100 = arith.mulf %94, %94 : vector<16x256xf32>
    %cst_35 = arith.constant dense<0.000000e+00> : vector<16xf32>
    %101 = vector.multi_reduction <add>, %100, %cst_35 [1] : vector<16x256xf32> to vector<16xf32>
    %102 = vector.shape_cast %101 : vector<16xf32> to vector<16x1xf32>
    %c0_36 = arith.constant 0 : index
    %c0_37 = arith.constant 0 : index
    %c0_38 = arith.constant 0 : index
    %103 = vector.load %arg7[%c0_36, %c0_37, %c0_38] : memref<1x16x1xf32, #tpu.memory_space<vmem>>, vector<1x16x1xf32>
    %104 = vector.shape_cast %103 : vector<1x16x1xf32> to vector<16x1xf32>
    %105 = vector.shape_cast %102 : vector<16x1xf32> to vector<1x16x1xf32>
    tpu.vector_store %arg7[%c0_36, %c0_37, %c0_38], %105 {strides = array<i32>} : memref<1x16x1xf32, #tpu.memory_space<vmem>>, vector<1x16x1xf32>,
    return
  }
  func.func @transform_0(%arg0: i32) -> (i32, i32, i32) {
    %c0_i32 = arith.constant 0 : i32
    %c0_i32_0 = arith.constant 0 : i32
    %c0_i32_1 = arith.constant 0 : i32
    return %arg0, %c0_i32, %c0_i32_0 : i32, i32, i32
  }
  func.func @transform_1(%arg0: i32) -> (i32, i32) {
    %c0_i32 = arith.constant 0 : i32
    %c0_i32_0 = arith.constant 0 : i32
    %c0_i32_1 = arith.constant 0 : i32
    return %c0_i32, %c0_i32_0 : i32, i32
  }
  func.func @transform_2(%arg0: i32) -> (i32, i32) {
    %c0_i32 = arith.constant 0 : i32
    %c0_i32_0 = arith.constant 0 : i32
    %c0_i32_1 = arith.constant 0 : i32
    return %c0_i32, %c0_i32_0 : i32, i32
  }
  func.func @transform_3(%arg0: i32) -> (i32, i32, i32) {
    %c0_i32 = arith.constant 0 : i32
    %c0_i32_0 = arith.constant 0 : i32
    %c0_i32_1 = arith.constant 0 : i32
    %c0_i32_2 = arith.constant 0 : i32
    return %c0_i32, %c0_i32_0, %c0_i32_1 : i32, i32, i32
  }
  func.func @transform_4(%arg0: i32) -> (i32, i32, i32) {
    %c0_i32 = arith.constant 0 : i32
    %c0_i32_0 = arith.constant 0 : i32
    %c0_i32_1 = arith.constant 0 : i32
    return %arg0, %c0_i32, %c0_i32_0 : i32, i32, i32
  }
  func.func @transform_5(%arg0: i32) -> (i32, i32, i32) {
    %c0_i32 = arith.constant 0 : i32
    %c0_i32_0 = arith.constant 0 : i32
    %c0_i32_1 = arith.constant 0 : i32
    return %arg0, %c0_i32, %c0_i32_0 : i32, i32, i32
  }
  func.func @transform_6(%arg0: i32) -> (i32, i32, i32) {
    %c0_i32 = arith.constant 0 : i32
    %c0_i32_0 = arith.constant 0 : i32
    %c0_i32_1 = arith.constant 0 : i32
    return %arg0, %c0_i32, %c0_i32_0 : i32, i32, i32
  }
}

module attributes {stable_mosaic.version = 11 : i64} {
  func.func @residual_kernel(%arg0: i32, %arg1: memref<1x32x256xbf16, #tpu.memory_space<vmem>>, %arg2: memref<32x1xf32, #tpu.memory_space<vmem>>, %arg3: memref<32x1xf32, #tpu.memory_space<vmem>>, %arg4: memref<1x32x256xbf16, #tpu.memory_space<vmem>>, %arg5: memref<32x1xf32, #tpu.memory_space<vmem>>, %arg6: memref<32x1xf32, #tpu.memory_space<vmem>>, %arg7: memref<1x32x256xf32, #tpu.memory_space<vmem>>) attributes {dimension_semantics = [#tpu.dimension_semantics<parallel>], iteration_bounds = array<i64: 2>, scalar_prefetch = 0 : i64, scratch_operands = 0 : i64, tpu.core_type = #tpu.core_type<tc>, window_params = [{transform_indices = @transform_0, window_bounds = array<i64: 1, 32, 256>}, {pipeline_mode = #tpu.pipeline_mode<synchronous>, transform_indices = @transform_1, window_bounds = array<i64: 32, 1>}, {pipeline_mode = #tpu.pipeline_mode<synchronous>, transform_indices = @transform_2, window_bounds = array<i64: 32, 1>}, {transform_indices = @transform_3, window_bounds = array<i64: 1, 32, 256>}, {pipeline_mode = #tpu.pipeline_mode<synchronous>, transform_indices = @transform_4, window_bounds = array<i64: 32, 1>}, {pipeline_mode = #tpu.pipeline_mode<synchronous>, transform_indices = @transform_5, window_bounds = array<i64: 32, 1>}, {transform_indices = @transform_6, window_bounds = array<i64: 1, 32, 256>}]} {
    %c0 = arith.constant 0 : index
    %c0_0 = arith.constant 0 : index
    %c0_1 = arith.constant 0 : index
    %0 = vector.load %arg1[%c0, %c0_0, %c0_1] : memref<1x32x256xbf16, #tpu.memory_space<vmem>>, vector<1x32x256xbf16>
    %1 = vector.shape_cast %0 : vector<1x32x256xbf16> to vector<32x256xbf16>
    %2 = arith.extf %1 : vector<32x256xbf16> to vector<32x256xf32>
    %c0_2 = arith.constant 0 : index
    %c0_3 = arith.constant 0 : index
    %3 = vector.load %arg2[%c0_2, %c0_3] : memref<32x1xf32, #tpu.memory_space<vmem>>, vector<32x1xf32>
    %4 = vector.broadcast %3 : vector<32x1xf32> to vector<32x256xf32>
    %5 = arith.mulf %2, %4 : vector<32x256xf32>
    %c0_4 = arith.constant 0 : index
    %c0_5 = arith.constant 0 : index
    %6 = vector.load %arg3[%c0_4, %c0_5] : memref<32x1xf32, #tpu.memory_space<vmem>>, vector<32x1xf32>
    %7 = vector.broadcast %6 : vector<32x1xf32> to vector<32x256xf32>
    %8 = arith.addf %5, %7 : vector<32x256xf32>
    %c0_6 = arith.constant 0 : index
    %c0_7 = arith.constant 0 : index
    %c0_8 = arith.constant 0 : index
    %9 = vector.load %arg4[%c0_6, %c0_7, %c0_8] : memref<1x32x256xbf16, #tpu.memory_space<vmem>>, vector<1x32x256xbf16>
    %10 = vector.shape_cast %9 : vector<1x32x256xbf16> to vector<32x256xbf16>
    %11 = arith.extf %10 : vector<32x256xbf16> to vector<32x256xf32>
    %c0_9 = arith.constant 0 : index
    %c0_10 = arith.constant 0 : index
    %12 = vector.load %arg5[%c0_9, %c0_10] : memref<32x1xf32, #tpu.memory_space<vmem>>, vector<32x1xf32>
    %13 = vector.broadcast %12 : vector<32x1xf32> to vector<32x256xf32>
    %14 = arith.mulf %11, %13 : vector<32x256xf32>
    %c0_11 = arith.constant 0 : index
    %c0_12 = arith.constant 0 : index
    %15 = vector.load %arg6[%c0_11, %c0_12] : memref<32x1xf32, #tpu.memory_space<vmem>>, vector<32x1xf32>
    %16 = vector.broadcast %15 : vector<32x1xf32> to vector<32x256xf32>
    %17 = arith.addf %14, %16 : vector<32x256xf32>
    %18 = arith.addf %8, %17 : vector<32x256xf32>
    %cst = arith.constant 0.000000e+00 : f32
    %19 = vector.broadcast %cst : f32 to vector<32x256xf32>
    %20 = arith.maximumf %18, %19 : vector<32x256xf32>
    %c0_13 = arith.constant 0 : index
    %c0_14 = arith.constant 0 : index
    %c0_15 = arith.constant 0 : index
    %21 = vector.load %arg7[%c0_13, %c0_14, %c0_15] : memref<1x32x256xf32, #tpu.memory_space<vmem>>, vector<1x32x256xf32>
    %22 = vector.shape_cast %21 : vector<1x32x256xf32> to vector<32x256xf32>
    %23 = vector.shape_cast %20 : vector<32x256xf32> to vector<1x32x256xf32>
    tpu.vector_store %arg7[%c0_13, %c0_14, %c0_15], %23 {strides = array<i32>} : memref<1x32x256xf32, #tpu.memory_space<vmem>>, vector<1x32x256xf32>,
    return
  }
  func.func @transform_0(%arg0: i32) -> (i32, i32, i32) {
    %c0_i32 = arith.constant 0 : i32
    %c0_i32_0 = arith.constant 0 : i32
    %c0_i32_1 = arith.constant 0 : i32
    return %arg0, %c0_i32, %c0_i32_0 : i32, i32, i32
  }
  func.func @transform_1(%arg0: i32) -> (i32, i32) {
    %c0_i32 = arith.constant 0 : i32
    %c0_i32_0 = arith.constant 0 : i32
    %c0_i32_1 = arith.constant 0 : i32
    return %c0_i32, %c0_i32_0 : i32, i32
  }
  func.func @transform_2(%arg0: i32) -> (i32, i32) {
    %c0_i32 = arith.constant 0 : i32
    %c0_i32_0 = arith.constant 0 : i32
    %c0_i32_1 = arith.constant 0 : i32
    return %c0_i32, %c0_i32_0 : i32, i32
  }
  func.func @transform_3(%arg0: i32) -> (i32, i32, i32) {
    %c0_i32 = arith.constant 0 : i32
    %c0_i32_0 = arith.constant 0 : i32
    %c0_i32_1 = arith.constant 0 : i32
    return %arg0, %c0_i32, %c0_i32_0 : i32, i32, i32
  }
  func.func @transform_4(%arg0: i32) -> (i32, i32) {
    %c0_i32 = arith.constant 0 : i32
    %c0_i32_0 = arith.constant 0 : i32
    %c0_i32_1 = arith.constant 0 : i32
    return %c0_i32, %c0_i32_0 : i32, i32
  }
  func.func @transform_5(%arg0: i32) -> (i32, i32) {
    %c0_i32 = arith.constant 0 : i32
    %c0_i32_0 = arith.constant 0 : i32
    %c0_i32_1 = arith.constant 0 : i32
    return %c0_i32, %c0_i32_0 : i32, i32
  }
  func.func @transform_6(%arg0: i32) -> (i32, i32, i32) {
    %c0_i32 = arith.constant 0 : i32
    %c0_i32_0 = arith.constant 0 : i32
    %c0_i32_1 = arith.constant 0 : i32
    return %arg0, %c0_i32, %c0_i32_0 : i32, i32, i32
  }
}

module attributes {stable_mosaic.version = 11 : i64} {
  func.func @conv1x1_affine_stats_kernel(%arg0: i32, %arg1: memref<1x16x256xbf16, #tpu.memory_space<vmem>>, %arg2: memref<16x1xf32, #tpu.memory_space<vmem>>, %arg3: memref<16x1xf32, #tpu.memory_space<vmem>>, %arg4: memref<32x16xbf16, #tpu.memory_space<vmem>>, %arg5: memref<1x32x256xbf16, #tpu.memory_space<vmem>>, %arg6: memref<1x32x1xf32, #tpu.memory_space<vmem>>, %arg7: memref<1x32x1xf32, #tpu.memory_space<vmem>>) attributes {dimension_semantics = [#tpu.dimension_semantics<parallel>], iteration_bounds = array<i64: 2>, scalar_prefetch = 0 : i64, scratch_operands = 0 : i64, tpu.core_type = #tpu.core_type<tc>, window_params = [{transform_indices = @transform_0, window_bounds = array<i64: 1, 16, 256>}, {pipeline_mode = #tpu.pipeline_mode<synchronous>, transform_indices = @transform_1, window_bounds = array<i64: 16, 1>}, {pipeline_mode = #tpu.pipeline_mode<synchronous>, transform_indices = @transform_2, window_bounds = array<i64: 16, 1>}, {pipeline_mode = #tpu.pipeline_mode<synchronous>, transform_indices = @transform_3, window_bounds = array<i64: 32, 16>}, {transform_indices = @transform_4, window_bounds = array<i64: 1, 32, 256>}, {transform_indices = @transform_5, window_bounds = array<i64: 1, 32, 1>}, {transform_indices = @transform_6, window_bounds = array<i64: 1, 32, 1>}]} {
    %c0 = arith.constant 0 : index
    %c0_0 = arith.constant 0 : index
    %c0_1 = arith.constant 0 : index
    %0 = vector.load %arg1[%c0, %c0_0, %c0_1] : memref<1x16x256xbf16, #tpu.memory_space<vmem>>, vector<1x16x256xbf16>
    %1 = vector.shape_cast %0 : vector<1x16x256xbf16> to vector<16x256xbf16>
    %2 = arith.extf %1 : vector<16x256xbf16> to vector<16x256xf32>
    %c0_2 = arith.constant 0 : index
    %c0_3 = arith.constant 0 : index
    %3 = vector.load %arg2[%c0_2, %c0_3] : memref<16x1xf32, #tpu.memory_space<vmem>>, vector<16x1xf32>
    %4 = vector.broadcast %3 : vector<16x1xf32> to vector<16x256xf32>
    %5 = arith.mulf %2, %4 : vector<16x256xf32>
    %c0_4 = arith.constant 0 : index
    %c0_5 = arith.constant 0 : index
    %6 = vector.load %arg3[%c0_4, %c0_5] : memref<16x1xf32, #tpu.memory_space<vmem>>, vector<16x1xf32>
    %7 = vector.broadcast %6 : vector<16x1xf32> to vector<16x256xf32>
    %8 = arith.addf %5, %7 : vector<16x256xf32>
    %cst = arith.constant 0.000000e+00 : f32
    %9 = vector.broadcast %cst : f32 to vector<16x256xf32>
    %10 = arith.maximumf %8, %9 : vector<16x256xf32>
    %c0_6 = arith.constant 0 : index
    %c0_7 = arith.constant 0 : index
    %11 = vector.load %arg4[%c0_6, %c0_7] : memref<32x16xbf16, #tpu.memory_space<vmem>>, vector<32x16xbf16>
    %12 = arith.truncf %10 : vector<16x256xf32> to vector<16x256xbf16>
    %cst_8 = arith.constant dense<0.000000e+00> : vector<32x256xf32>
    %13 = tpu.matmul %11, %12, %cst_8 {dimension_numbers = #tpu.dot_dimension_numbers<[1], [0], [0], [1], [0, 0, 1, 1], [], []>} : vector<32x16xbf16>, vector<16x256xbf16>, vector<32x256xf32> -> vector<32x256xf32>
    %14 = arith.truncf %13 : vector<32x256xf32> to vector<32x256xbf16>
    %c0_9 = arith.constant 0 : index
    %c0_10 = arith.constant 0 : index
    %c0_11 = arith.constant 0 : index
    %15 = vector.load %arg5[%c0_9, %c0_10, %c0_11] : memref<1x32x256xbf16, #tpu.memory_space<vmem>>, vector<1x32x256xbf16>
    %16 = vector.shape_cast %15 : vector<1x32x256xbf16> to vector<32x256xbf16>
    %17 = vector.shape_cast %14 : vector<32x256xbf16> to vector<1x32x256xbf16>
    tpu.vector_store %arg5[%c0_9, %c0_10, %c0_11], %17 {strides = array<i32>} : memref<1x32x256xbf16, #tpu.memory_space<vmem>>, vector<1x32x256xbf16>,
    %18 = arith.extf %14 : vector<32x256xbf16> to vector<32x256xf32>
    %cst_12 = arith.constant dense<0.000000e+00> : vector<32xf32>
    %19 = vector.multi_reduction <add>, %18, %cst_12 [1] : vector<32x256xf32> to vector<32xf32>
    %20 = vector.shape_cast %19 : vector<32xf32> to vector<32x1xf32>
    %c0_13 = arith.constant 0 : index
    %c0_14 = arith.constant 0 : index
    %c0_15 = arith.constant 0 : index
    %21 = vector.load %arg6[%c0_13, %c0_14, %c0_15] : memref<1x32x1xf32, #tpu.memory_space<vmem>>, vector<1x32x1xf32>
    %22 = vector.shape_cast %21 : vector<1x32x1xf32> to vector<32x1xf32>
    %23 = vector.shape_cast %20 : vector<32x1xf32> to vector<1x32x1xf32>
    tpu.vector_store %arg6[%c0_13, %c0_14, %c0_15], %23 {strides = array<i32>} : memref<1x32x1xf32, #tpu.memory_space<vmem>>, vector<1x32x1xf32>,
    %24 = arith.mulf %18, %18 : vector<32x256xf32>
    %cst_16 = arith.constant dense<0.000000e+00> : vector<32xf32>
    %25 = vector.multi_reduction <add>, %24, %cst_16 [1] : vector<32x256xf32> to vector<32xf32>
    %26 = vector.shape_cast %25 : vector<32xf32> to vector<32x1xf32>
    %c0_17 = arith.constant 0 : index
    %c0_18 = arith.constant 0 : index
    %c0_19 = arith.constant 0 : index
    %27 = vector.load %arg7[%c0_17, %c0_18, %c0_19] : memref<1x32x1xf32, #tpu.memory_space<vmem>>, vector<1x32x1xf32>
    %28 = vector.shape_cast %27 : vector<1x32x1xf32> to vector<32x1xf32>
    %29 = vector.shape_cast %26 : vector<32x1xf32> to vector<1x32x1xf32>
    tpu.vector_store %arg7[%c0_17, %c0_18, %c0_19], %29 {strides = array<i32>} : memref<1x32x1xf32, #tpu.memory_space<vmem>>, vector<1x32x1xf32>,
    return
  }
  func.func @transform_0(%arg0: i32) -> (i32, i32, i32) {
    %c0_i32 = arith.constant 0 : i32
    %c0_i32_0 = arith.constant 0 : i32
    %c0_i32_1 = arith.constant 0 : i32
    return %arg0, %c0_i32, %c0_i32_0 : i32, i32, i32
  }
  func.func @transform_1(%arg0: i32) -> (i32, i32) {
    %c0_i32 = arith.constant 0 : i32
    %c0_i32_0 = arith.constant 0 : i32
    %c0_i32_1 = arith.constant 0 : i32
    return %c0_i32, %c0_i32_0 : i32, i32
  }
  func.func @transform_2(%arg0: i32) -> (i32, i32) {
    %c0_i32 = arith.constant 0 : i32
    %c0_i32_0 = arith.constant 0 : i32
    %c0_i32_1 = arith.constant 0 : i32
    return %c0_i32, %c0_i32_0 : i32, i32
  }
  func.func @transform_3(%arg0: i32) -> (i32, i32) {
    %c0_i32 = arith.constant 0 : i32
    %c0_i32_0 = arith.constant 0 : i32
    %c0_i32_1 = arith.constant 0 : i32
    return %c0_i32, %c0_i32_0 : i32, i32
  }
  func.func @transform_4(%arg0: i32) -> (i32, i32, i32) {
    %c0_i32 = arith.constant 0 : i32
    %c0_i32_0 = arith.constant 0 : i32
    %c0_i32_1 = arith.constant 0 : i32
    return %arg0, %c0_i32, %c0_i32_0 : i32, i32, i32
  }
  func.func @transform_5(%arg0: i32) -> (i32, i32, i32) {
    %c0_i32 = arith.constant 0 : i32
    %c0_i32_0 = arith.constant 0 : i32
    %c0_i32_1 = arith.constant 0 : i32
    return %arg0, %c0_i32, %c0_i32_0 : i32, i32, i32
  }
  func.func @transform_6(%arg0: i32) -> (i32, i32, i32) {
    %c0_i32 = arith.constant 0 : i32
    %c0_i32_0 = arith.constant 0 : i32
    %c0_i32_1 = arith.constant 0 : i32
    return %arg0, %c0_i32, %c0_i32_0 : i32, i32, i32
  }
}

</mosaic_0001>

<bundles_post_ra>
// kernel: bottleneck_forward.7
= control target key start
LH: loop header
LB: loop body
LE: loop exit
PB: predicated region body
PF: predicated region fallthrough
CT: control target
= control target key end

     0   :  { %s586_s21 = smov 0   ;;  %s662_s0 = inlined_call_operand.vmem [shape: bf16[2,32,256], index: 0, kind: input, shape index: {}]   ;;  %s663_s1 = inlined_call_operand.vmem [shape: f32[32,1], index: 1, kind: input, shape index: {}]   ;;  %s664_s2 = inlined_call_operand.vmem [shape: f32[32,1], index: 2, kind: input, shape index: {}]   ;;  %s665_s3 = inlined_call_operand.vmem [shape: bf16[2,32,256], index: 3, kind: input, shape index: {}]   ;;  %s666_s4 = inlined_call_operand.vmem [shape: f32[32,1], index: 4, kind: input, shape index: {}]   ;;  %s667_s5 = inlined_call_operand.vmem [shape: f32[32,1], index: 5, kind: input, shape index: {}]   ;;  %s668_s6 = inlined_call_operand.vmem [shape: f32[2,32,256], index: 6, kind: output, shape index: {}]  }
   0x1 LB: > { %s515_s22 = sadd.s32 4294967295, %s548_s21   ;;  %p519_p0 = scmp.ge.s32.totalorder %s548_s21, 1  ;;  %s548_s21 = sphi %s586_s21, %s16_s21  }
   0x2   : > { %p222_p1 = scmp.lt.s32.totalorder %s548_s21, 3 }
   0x4   : > { %p223_p2 = pnand %p519_p0, %p222_p1 }
   0x5   : > { %v286_v0 = vld [vmem:[%s663_s1 + $0x10] sm:$0xff] (!%p223_p2)  ;;  %v284_v1 = vld [vmem:[%s663_s1] sm:$0xff] (!%p223_p2)  ;;  %v550_v2 = vmov (!%p223_p2), 0   ;;  %v287_v3 = vld [vmem:[%s663_s1 + $0x18] sm:$0xff] (!%p223_p2)  ;;  %p257_p3 = scmp.lt.s32.totalorder (!%p223_p2), %s515_s22, 1 }
   0x6   : > { %226 = sbr.rel (%p223_p2) target bundleno = 172 (0xac), region = 44  ;;  %541 = vset.pattern.permute.xlu1 (!%p223_p2), %v550_v2  ;;  %540 = vset.pattern.permute.xlu0 (!%p223_p2), %v550_v2  ;;  %v285_v4 = vld [vmem:[%s663_s1 + $0x8] sm:$0xff] (!%p223_p2)  ;;  %v360_v6 = vld [vmem:[%s666_s4] sm:$0xff] (!%p223_p2)  ;;  %v363_v7 = vld [vmem:[%s666_s4 + $0x18] sm:$0xff] (!%p223_p2) }
   0x7   : > { %300 = vperm.xlu1 (!%p223_p2), %541, %v286_v0   ;;  %290 = vperm.xlu0 (!%p223_p2), %540, %v284_v1   ;;  %v361_v5 = vld [vmem:[%s666_s4 + $0x8] sm:$0xff] (!%p223_p2)  ;;  %v362_v8 = vld [vmem:[%s666_s4 + $0x10] sm:$0xff] (!%p223_p2)  ;;  %v316_v10 = vld [vmem:[%s664_s2] sm:$0xff] (!%p223_p2) }
   0x8   : > { %v317_v9 = vld [vmem:[%s664_s2 + $0x8] sm:$0xff] (!%p223_p2)  ;;  %v319_v11 = vld [vmem:[%s664_s2 + $0x18] sm:$0xff] (!%p223_p2)  ;;  %v318_v12 = vld [vmem:[%s664_s2 + $0x10] sm:$0xff] (!%p223_p2) }
   0x9   : > { %v393_v13 = vld [vmem:[%s667_s5 + $0x8] sm:$0xff] (!%p223_p2)  ;;  %v392_v14 = vld [vmem:[%s667_s5] sm:$0xff] (!%p223_p2)  ;;  %v395_v15 = vld [vmem:[%s667_s5 + $0x18] sm:$0xff] (!%p223_p2) }
   0xa   : > { %v394_v16 = vld [vmem:[%s667_s5 + $0x10] sm:$0xff] (!%p223_p2) }
   0xb   : > { %305 = vperm.xlu1 (!%p223_p2), %541, %v287_v3   ;;  %295 = vperm.xlu0 (!%p223_p2), %540, %v285_v4  }
   0xd   : > { %s670_s22 = smov (!%p257_p3, %s515_s22), 1 }
   0xe   : > { %s528_s9 = sshll.u32 %s670_s22, 5  ;;  %s530_s16 = sshll.u32 %s670_s22, 6 }
   0xf   : > { %371 = vperm.xlu1 %541, %v361_v5   ;;  %366 = vperm.xlu0 %540, %v360_v6   ;;  %s261_s12 = scalar_lea.vmem %s662_s0, %s528_s9  ;;  %s266_s15 = scalar_lea.vmem %s665_s3, %s528_s9 }
  0x10   : > { %v274_v25 = vld [vmem:[%s261_s12 + $0x10] sm:$0xff]  ;;  %v272_v26 = vld [vmem:[%s261_s12] sm:$0xff]  ;;  %v275_v27 = vld [vmem:[%s261_s12 + $0x18] sm:$0xff]  ;;  %s271_s19 = scalar_lea.vmem %s668_s6, %s530_s16 }
  0x11   : > { %v273_v28 = vld [vmem:[%s261_s12 + $0x8] sm:$0xff]  ;;  %v348_v30 = vld [vmem:[%s266_s15] sm:$0xff]  ;;  %v280_v33 = vunpack.c.l.bf16 %v274_v25  ;;  %v281_v34 = vunpack.c.h.bf16 %v274_v25  ;;  %v276_v35 = vunpack.c.l.bf16 %v272_v26  ;;  %v277_v36 = vunpack.c.h.bf16 %v272_v26  ;;  %v351_v37 = vld [vmem:[%s266_s15 + $0x18] sm:$0xff] }
  0x12   : > { %v349_v29 = vld [vmem:[%s266_s15 + $0x8] sm:$0xff]  ;;  %v350_v38 = vld [vmem:[%s266_s15 + $0x10] sm:$0xff]  ;;  %v282_v39 = vunpack.c.l.bf16 %v275_v27  ;;  %v283_v40 = vunpack.c.h.bf16 %v275_v27  ;;  %v278_v41 = vunpack.c.l.bf16 %v273_v28  ;;  %v279_v42 = vunpack.c.h.bf16 %v273_v28 }
  0x13   : > { %381 = vperm.xlu1 %541, %v363_v7   ;;  %376 = vperm.xlu0 %540, %v362_v8   ;;  %v354_v43 = vunpack.c.l.bf16 %v349_v29  ;;  %v355_v44 = vunpack.c.h.bf16 %v349_v29  ;;  %v352_v45 = vunpack.c.l.bf16 %v348_v30  ;;  %v353_v46 = vunpack.c.h.bf16 %v348_v30 }
  0x14   : > { %v358_v47 = vunpack.c.l.bf16 %v351_v37  ;;  %v359_v48 = vunpack.c.h.bf16 %v351_v37  ;;  %v356_v49 = vunpack.c.l.bf16 %v350_v38  ;;  %v357_v50 = vunpack.c.h.bf16 %v350_v38 }
  0x17   : > { %327 = vperm.xlu1 %541, %v317_v9   ;;  %322 = vperm.xlu0 %540, %v316_v10  }
  0x1b   : > { %337 = vperm.xlu1 %541, %v319_v11   ;;  %332 = vperm.xlu0 %540, %v318_v12  }
  0x1f   : > { %403 = vperm.xlu1 %541, %v393_v13   ;;  %398 = vperm.xlu0 %540, %v392_v14  }
  0x23   : > { %413 = vperm.xlu1 %541, %v395_v15   ;;  %408 = vperm.xlu0 %540, %v394_v16  }
  0x86   : > { %v301_v17 = vpop.permute.xlu1 %300  ;;  %v291_v18 = vpop.permute.xlu0 %290 }
  0x87   : > { %v312_v53 = vmul.f32 %v301_v17, %v280_v33  ;;  %v313_v54 = vmul.f32 %v301_v17, %v281_v34  ;;  %v308_v55 = vmul.f32 %v291_v18, %v276_v35  ;;  %v309_v56 = vmul.f32 %v291_v18, %v277_v36 }
  0x8a   : > { %v306_v19 = vpop.permute.xlu1 %305  ;;  %v296_v20 = vpop.permute.xlu0 %295 }
  0x8b   : > { %v314_v57 = vmul.f32 %v306_v19, %v282_v39  ;;  %v315_v58 = vmul.f32 %v306_v19, %v283_v40  ;;  %v310_v59 = vmul.f32 %v296_v20, %v278_v41  ;;  %v311_v60 = vmul.f32 %v296_v20, %v279_v42 }
  0x8e   : > { %v372_v21 = vpop.permute.xlu1 %371  ;;  %v367_v22 = vpop.permute.xlu0 %366 }
  0x8f   : > { %v386_v61 = vmul.f32 %v372_v21, %v354_v43  ;;  %v387_v62 = vmul.f32 %v372_v21, %v355_v44  ;;  %v384_v63 = vmul.f32 %v367_v22, %v352_v45  ;;  %v385_v0 = vmul.f32 %v367_v22, %v353_v46 }
  0x92   : > { %v382_v23 = vpop.permute.xlu1 %381  ;;  %v377_v24 = vpop.permute.xlu0 %376 }
  0x93   : > { %v390_v11 = vmul.f32 %v382_v23, %v358_v47  ;;  %v391_v12 = vmul.f32 %v382_v23, %v359_v48  ;;  %v388_v13 = vmul.f32 %v377_v24, %v356_v49  ;;  %v389_v14 = vmul.f32 %v377_v24, %v357_v50 }
  0x96   : > { %v328_v31 = vpop.permute.xlu1 %327  ;;  %v323_v32 = vpop.permute.xlu0 %322 }
  0x97   : > { %v342_v1 = vadd.f32 %v328_v31, %v310_v59  ;;  %v343_v2 = vadd.f32 %v328_v31, %v311_v60  ;;  %v340_v3 = vadd.f32 %v323_v32, %v308_v55  ;;  %v341_v4 = vadd.f32 %v323_v32, %v309_v56 }
  0x9a   : > { %v338_v51 = vpop.permute.xlu1 %337  ;;  %v333_v52 = vpop.permute.xlu0 %332 }
  0x9b   : > { %v346_v19 = vadd.f32 %v338_v51, %v314_v57  ;;  %v347_v20 = vadd.f32 %v338_v51, %v315_v58  ;;  %v344_v21 = vadd.f32 %v333_v52, %v312_v53  ;;  %v345_v22 = vadd.f32 %v333_v52, %v313_v54 }
  0x9e   : > { %v404_v5 = vpop.permute.xlu1 %403  ;;  %v399_v6 = vpop.permute.xlu0 %398 }
  0x9f   : > { %v418_v7 = vadd.f32 %v404_v5, %v386_v61  ;;  %v419_v8 = vadd.f32 %v404_v5, %v387_v62  ;;  %v416_v9 = vadd.f32 %v399_v6, %v384_v63  ;;  %v417_v10 = vadd.f32 %v399_v6, %v385_v0 }
  0xa1   : > { %v426_v15 = vadd.f32 %v418_v7, %v342_v1  ;;  %v427_v16 = vadd.f32 %v419_v8, %v343_v2  ;;  %v424_v17 = vadd.f32 %v416_v9, %v340_v3  ;;  %v425_v18 = vadd.f32 %v417_v10, %v341_v4 }
  0xa2   : > { %v414_v25 = vpop.permute.xlu1 %413  ;;  %v409_v26 = vpop.permute.xlu0 %408 }
  0xa3   : > { %v434_v27 = vmax.f32 %v426_v15, 0.0  ;;  %v435_v28 = vmax.f32 %v427_v16, 0.0  ;;  %v432_v29 = vmax.f32 %v424_v17, 0.0  ;;  %v433_v23 = vmax.f32 %v425_v18, 0.0 }
  0xa4   : > { %v422_v30 = vadd.f32 %v414_v25, %v390_v11  ;;  %v423_v24 = vadd.f32 %v414_v25, %v391_v12  ;;  %v420_v31 = vadd.f32 %v409_v26, %v388_v13  ;;  %v421_v32 = vadd.f32 %v409_v26, %v389_v14 }
  0xa5   : > { %442 = vst [vmem:[%s271_s19 + $0x10] sm:$0xff] %v434_v27  ;;  %443 = vst [vmem:[%s271_s19 + $0x18] sm:$0xff] %v435_v28 }
  0xa6   : > { %440 = vst [vmem:[%s271_s19] sm:$0xff] %v432_v29  ;;  %441 = vst [vmem:[%s271_s19 + $0x8] sm:$0xff] %v433_v23  ;;  %v430_v33 = vadd.f32 %v422_v30, %v346_v19  ;;  %v431_v34 = vadd.f32 %v423_v24, %v347_v20  ;;  %v428_v35 = vadd.f32 %v420_v31, %v344_v21 }
  0xa7   : > { %v429_v36 = vadd.f32 %v421_v32, %v345_v22 }
  0xa8   : > { %v438_v37 = vmax.f32 %v430_v33, 0.0  ;;  %v439_v38 = vmax.f32 %v431_v34, 0.0  ;;  %v436_v39 = vmax.f32 %v428_v35, 0.0 }
  0xa9   : > { %v437_v40 = vmax.f32 %v429_v36, 0.0 }
  0xaa   : > { %446 = vst [vmem:[%s271_s19 + $0x30] sm:$0xff] %v438_v37  ;;  %447 = vst [vmem:[%s271_s19 + $0x38] sm:$0xff] %v439_v38 }
  0xab   : > { %444 = vst [vmem:[%s271_s19 + $0x20] sm:$0xff] %v436_v39  ;;  %445 = vst [vmem:[%s271_s19 + $0x28] sm:$0xff] %v437_v40 }
  0xac PF: > { %s16_s21 = sadd.s32 1, %s548_s21  }
  0xad   : > { %p13_p4 = scmp.ge.s32.totalorder %s16_s21, 4  }
  0xaf   :  { %15 = sbr.rel (!%p13_p4) target bundleno = 1 (0x1), region = 77 }

// kernel: bottleneck_forward.4
= control target key start
LH: loop header
LB: loop body
LE: loop exit
PB: predicated region body
PF: predicated region fallthrough
CT: control target
= control target key end

     0   :  { %s955_s27 = smov 0   ;;  %s1025_s0 = inlined_call_operand.vmem [shape: f32[2,8,256], index: 0, kind: input, shape index: {}]   ;;  %s1026_s1 = inlined_call_operand.vmem [shape: bf16[16,8], index: 1, kind: input, shape index: {}]   ;;  %s1027_s2 = inlined_call_operand.vmem [shape: bf16[32,8], index: 2, kind: input, shape index: {}]   ;;  %s1028_s3 = inlined_call_operand.vmem [shape: bf16[2,16,256], index: 3, kind: output, shape index: {0}]   ;;  %s1029_s4 = inlined_call_operand.vmem [shape: bf16[2,32,256], index: 4, kind: output, shape index: {1}]   ;;  %s1030_s5 = inlined_call_operand.vmem [shape: f32[2,16,1], index: 5, kind: output, shape index: {2}]   ;;  %s1031_s6 = inlined_call_operand.vmem [shape: f32[2,16,1], index: 6, kind: output, shape index: {3}]   ;;  %s1032_s7 = inlined_call_operand.vmem [shape: f32[2,32,1], index: 7, kind: output, shape index: {4}]   ;;  %s1033_s8 = inlined_call_operand.vmem [shape: f32[2,32,1], index: 8, kind: output, shape index: {5}]  }
   0x1 LB: > { %s841_s28 = sadd.s32 4294967295, %s907_s27   ;;  %p845_p0 = scmp.ge.s32.totalorder %s907_s27, 1  ;;  %s907_s27 = sphi %s955_s27, %s19_s27  }
   0x2   : > { %p273_p1 = scmp.lt.s32.totalorder %s907_s27, 3 }
   0x4   : > { %p274_p2 = pnand %p845_p0, %p273_p1 }
   0x5   : > { %p332_p3 = scmp.lt.s32.totalorder (!%p274_p2), %s841_s28, 1  ;;  %v909_v0 = vmov (!%p274_p2), 0   ;;  %vm383_vm0 = vcmask (!%p274_p2), 1043456   ;;  %v898_v6 = vld [vmem:[%s1026_s1] sm:$0xff] (!%p274_p2)   ;;  %vm379_vm1 = vcmask (!%p274_p2), 64512   ;;  %v900_v8 = vld [vmem:[%s1027_s2 + $0x8] sm:$0xff] (!%p274_p2)  }
   0x6   : > { %277 = sbr.rel (%p274_p2) target bundleno = 407 (0x197), region = 32  ;;  %422 = vmatprep.mubr.bf16.mxu0 (!%p274_p2), %v909_v0  ;;  %485 = vmatprep.mubr.bf16.mxu1 (!%p274_p2), %v909_v0  ;;  %v899_v7 = vld [vmem:[%s1027_s2] sm:$0xff] (!%p274_p2)   ;;  %vm566_vm2 = vcmask (!%p274_p2), 7168  }
   0xd   : > { %s1035_s28 = smov (!%p332_p3, %s841_s28), 1 }
   0xe   : > { %s963_s29 = sshll.u32 %s1035_s28, 4  ;;  %s978_s17 = sshll.u32 %s1035_s28, 5 }
   0xf   : > { %s336_s10 = scalar_lea.vmem %s1025_s0, %s963_s29  ;;  %s984_s20 = scalar_lea.vmem %s1029_s4, %s978_s17 }
  0x10   : > { %v369_v1 = vld [vmem:[%s336_s10 + $0x8] sm:$0xff]  ;;  %v368_v2 = vld [vmem:[%s336_s10] sm:$0xff]  ;;  %s341_s23 = scalar_lea.vmem %s1028_s3, %s963_s29  ;;  %s361_s26 = scalar_lea.vmem %s1032_s7, %s978_s17 }
  0x11   : > { %v371_v3 = vpack.c.bf16 %v369_v1, %v369_v1  ;;  %v370_v4 = vpack.c.bf16 %v368_v2, %v368_v2  ;;  %s351_s9 = scalar_lea.vmem %s1030_s5, %s963_s29  ;;  %s356_s12 = scalar_lea.vmem %s1031_s6, %s963_s29 }
  0x12   : > { %s366_s15 = scalar_lea.vmem %s1033_s8, %s978_s17 }
  0x13   : > { %861 = vmatprep.subr.msk.bf16.mxu0 %vm383_vm0, %v371_v3  ;;  %865 = vmatprep.subr.msk.bf16.mxu1 %vm383_vm0, %v371_v3  ;;  %v385_v5 = vsel %vm383_vm0, %v370_v4, 0 }
  0x14   : > { %391 = vmatpush1.bf16.msra.mxu0 %v385_v5  ;;  %454 = vmatpush1.bf16.msra.mxu1 %v385_v5 }
  0x17   : > { %862 = vmatmul.mubr.msk.bf16.vlgmr.msra.gmra.mrb[0].mxu0 %vm379_vm1, %v898_v6  ;;  %866 = vmatmul.mubr.msk.bf16.vlgmr.msra.gmra.mrb[0].mxu1 %vm379_vm1, %v899_v7 }
  0x18   : > { %495 = vmatprep.mubr.bf16.mxu1 %v909_v0 }
  0x1f   : > { %867 = vmatmul.mubr.msk.bf16.gmra.mrb[4].mxu1 %vm379_vm1, %v900_v8 }
  0xea   : > { %v424_v9 = vpop.f32.mrb[0].mxu0  ;;  %v487_v10 = vpop.f32.mrb[0].mxu1 }
  0xeb   : > { %v426_v11 = vpop.f32.mrb[1].mxu0  ;;  %v489_v12 = vpop.f32.mrb[1].mxu1 }
  0xec   : > { %v883_v13 = vpack.c.bf16 %v426_v11, %v424_v9  ;;  %v885_v14 = vpack.c.bf16 %v489_v12, %v487_v10  ;;  %v428_v15 = vpop.f32.mrb[2].mxu0  ;;  %v491_v16 = vpop.f32.mrb[2].mxu1 }
  0xed   : > { %v506_v17 = vpack.c.bf16 %v428_v15, %v424_v9  ;;  %v508_v18 = vpack.c.bf16 %v491_v16, %v487_v10  ;;  %v430_v19 = vpop.f32.mrb[3].mxu0  ;;  %v493_v20 = vpop.f32.mrb[3].mxu1 }
  0xee   : > { %544 = vst [vmem:[%s984_s20] sm:$0xff] %v885_v14  ;;  %v507_v21 = vpack.c.bf16 %v430_v19, %v426_v11  ;;  %v884_v22 = vpack.c.bf16 %v430_v19, %v428_v15  ;;  %522 = vst [vmem:[%s341_s23] sm:$0xff] %v883_v13  ;;  %v509_v23 = vpack.c.bf16 %v493_v20, %v489_v12 }
  0xef   : > { %v886_v24 = vpack.c.bf16 %v493_v20, %v491_v16  ;;  %v554_v25 = vunpack.c.h.bf16 %v508_v18  ;;  %v548_v26 = vunpack.c.l.bf16 %v506_v17  ;;  %v550_v27 = vunpack.c.h.bf16 %v506_v17 }
  0xf0   : > { %v552_v28 = vunpack.c.l.bf16 %v508_v18  ;;  %523 = vst [vmem:[%s341_s23 + $0x8] sm:$0xff] %v884_v22  ;;  %v551_v29 = vunpack.c.h.bf16 %v507_v21  ;;  %v555_v30 = vunpack.c.h.bf16 %v509_v23  ;;  %v549_v31 = vunpack.c.l.bf16 %v507_v21 }
  0xf1   : > { %545 = vst [vmem:[%s984_s20 + $0x8] sm:$0xff] %v886_v24  ;;  %v553_v32 = vunpack.c.l.bf16 %v509_v23  ;;  %v569_v33 = vmul.f32 %v548_v26, %v548_v26  ;;  %v571_v34 = vmul.f32 %v550_v27, %v550_v27  ;;  %v599_v35 = vmul.f32 %v554_v25, %v554_v25 }
  0xf2   : > { %v597_v36 = vmul.f32 %v552_v28, %v552_v28  ;;  %v584_v37 = vadd.f32 %v555_v30, %v554_v25  ;;  %v560_v38 = vadd.f32 %v549_v31, %v548_v26  ;;  %v497_v39 = vpop.f32.mrb[4].mxu1  ;;  %v570_v40 = vmul.f32 %v549_v31, %v549_v31 }
  0xf3   : > { %v563_v41 = vadd.f32 %v551_v29, %v550_v27  ;;  %v499_v42 = vpop.f32.mrb[5].mxu1  ;;  %v572_v43 = vmul.f32 %v551_v29, %v551_v29  ;;  %v581_v44 = vadd.f32 %v553_v32, %v552_v28  ;;  %v600_v45 = vmul.f32 %v555_v30, %v555_v30 }
  0xf4   : > { %v598_v46 = vmul.f32 %v553_v32, %v553_v32  ;;  %585 = vadd.xlane.f32.xlu1 %v584_v37  ;;  %561 = vadd.xlane.f32.xlu0 %v560_v38  ;;  %v887_v47 = vpack.c.bf16 %v499_v42, %v497_v39  ;;  %v573_v48 = vadd.f32 %v570_v40, %v569_v33  ;;  %v501_v49 = vpop.f32.mrb[6].mxu1 }
  0xf5   : > { %v510_v50 = vpack.c.bf16 %v501_v49, %v497_v39  ;;  %v503_v51 = vpop.f32.mrb[7].mxu1  ;;  %v576_v52 = vadd.f32 %v572_v43, %v571_v34  ;;  %v608_v53 = vadd.f32 %v600_v45, %v599_v35 }
  0xf6   : > { %v605_v54 = vadd.f32 %v598_v46, %v597_v36  ;;  %546 = vst [vmem:[%s984_s20 + $0x10] sm:$0xff] %v887_v47  ;;  %v511_v55 = vpack.c.bf16 %v503_v51, %v499_v42  ;;  %v888_v56 = vpack.c.bf16 %v503_v51, %v501_v49 }
  0xf7   : > { %v558_v57 = vunpack.c.h.bf16 %v510_v50  ;;  %v556_v58 = vunpack.c.l.bf16 %v510_v50 }
  0xf8   : > { %574 = vadd.xlane.f32.xlu1 %v573_v48  ;;  %564 = vadd.xlane.f32.xlu0 %v563_v41  ;;  %547 = vst [vmem:[%s984_s20 + $0x18] sm:$0xff] %v888_v56  ;;  %v557_v59 = vunpack.c.l.bf16 %v511_v55  ;;  %v559_v60 = vunpack.c.h.bf16 %v511_v55 }
  0xf9   : > { %v603_v61 = vmul.f32 %v558_v57, %v558_v57  ;;  %v601_v62 = vmul.f32 %v556_v58, %v556_v58 }
  0xfa   : > { %v590_v63 = vadd.f32 %v559_v60, %v558_v57  ;;  %v587_v0 = vadd.f32 %v557_v59, %v556_v58  ;;  %v604_v1 = vmul.f32 %v559_v60, %v559_v60  ;;  %v602_v2 = vmul.f32 %v557_v59, %v557_v59 }
  0xfc   : > { %577 = vadd.xlane.f32.xlu1 %v576_v52  ;;  %582 = vadd.xlane.f32.xlu0 %v581_v44  ;;  %v614_v3 = vadd.f32 %v604_v1, %v603_v61  ;;  %v611_v4 = vadd.f32 %v602_v2, %v601_v62 }
 0x100   : > { %609 = vadd.xlane.f32.xlu1 %v608_v53  ;;  %606 = vadd.xlane.f32.xlu0 %v605_v54 }
 0x104   : > { %591 = vadd.xlane.f32.xlu1 %v590_v63  ;;  %588 = vadd.xlane.f32.xlu0 %v587_v0 }
 0x108   : > { %615 = vadd.xlane.f32.xlu1 %v614_v3  ;;  %612 = vadd.xlane.f32.xlu0 %v611_v4 }
 0x181   : > { %v586_v5 = vpop.xlane.xlu1 %585  ;;  %v562_v6 = vpop.xlane.xlu0 %561 }
 0x182   : > { %594 = vst.msk [vmem:[%s361_s26 + $0x8] sm:$0xff] %vm566_vm2, %v586_v5  ;;  %567 = vst.msk [vmem:[%s351_s9] sm:$0xff] %vm566_vm2, %v562_v6 }
 0x185   : > { %v575_v7 = vpop.xlane.xlu1 %574  ;;  %v565_v8 = vpop.xlane.xlu0 %564 }
 0x186   : > { %579 = vst.msk [vmem:[%s356_s12] sm:$0xff] %vm566_vm2, %v575_v7  ;;  %568 = vst.msk [vmem:[%s351_s9 + $0x8] sm:$0xff] %vm566_vm2, %v565_v8 }
 0x189   : > { %v578_v9 = vpop.xlane.xlu1 %577  ;;  %v583_v10 = vpop.xlane.xlu0 %582 }
 0x18a   : > { %580 = vst.msk [vmem:[%s356_s12 + $0x8] sm:$0xff] %vm566_vm2, %v578_v9  ;;  %593 = vst.msk [vmem:[%s361_s26] sm:$0xff] %vm566_vm2, %v583_v10 }
 0x18d   : > { %v610_v11 = vpop.xlane.xlu1 %609  ;;  %v607_v12 = vpop.xlane.xlu0 %606 }
 0x18e   : > { %618 = vst.msk [vmem:[%s366_s15 + $0x8] sm:$0xff] %vm566_vm2, %v610_v11  ;;  %617 = vst.msk [vmem:[%s366_s15] sm:$0xff] %vm566_vm2, %v607_v12 }
 0x191   : > { %v592_v13 = vpop.xlane.xlu1 %591  ;;  %v589_v14 = vpop.xlane.xlu0 %588 }
 0x192   : > { %596 = vst.msk [vmem:[%s361_s26 + $0x18] sm:$0xff] %vm566_vm2, %v592_v13  ;;  %595 = vst.msk [vmem:[%s361_s26 + $0x10] sm:$0xff] %vm566_vm2, %v589_v14 }
 0x195   : > { %v616_v15 = vpop.xlane.xlu1 %615  ;;  %v613_v16 = vpop.xlane.xlu0 %612 }
 0x196   : > { %620 = vst.msk [vmem:[%s366_s15 + $0x18] sm:$0xff] %vm566_vm2, %v616_v15  ;;  %619 = vst.msk [vmem:[%s366_s15 + $0x10] sm:$0xff] %vm566_vm2, %v613_v16 }
 0x197 PF: > { %s19_s27 = sadd.s32 1, %s907_s27  }
 0x198   : > { %p16_p4 = scmp.ge.s32.totalorder %s19_s27, 4  }
 0x19a   :  { %18 = sbr.rel (!%p16_p4) target bundleno = 1 (0x1), region = 122 }

// kernel: bottleneck_forward.6
= control target key start
LH: loop header
LB: loop body
LE: loop exit
PB: predicated region body
PF: predicated region fallthrough
CT: control target
= control target key end

     0   :  { %s684_s21 = smov 0   ;;  %s742_s0 = inlined_call_operand.vmem [shape: bf16[2,16,256], index: 0, kind: input, shape index: {}]   ;;  %s743_s1 = inlined_call_operand.vmem [shape: f32[16,1], index: 1, kind: input, shape index: {}]   ;;  %s744_s2 = inlined_call_operand.vmem [shape: f32[16,1], index: 2, kind: input, shape index: {}]   ;;  %s745_s3 = inlined_call_operand.vmem [shape: bf16[32,16], index: 3, kind: input, shape index: {}]   ;;  %s746_s4 = inlined_call_operand.vmem [shape: bf16[2,32,256], index: 4, kind: output, shape index: {0}]   ;;  %s747_s5 = inlined_call_operand.vmem [shape: f32[2,32,1], index: 5, kind: output, shape index: {1}]   ;;  %s748_s6 = inlined_call_operand.vmem [shape: f32[2,32,1], index: 6, kind: output, shape index: {2}]  }
   0x1 LB: > { %s594_s22 = sadd.s32 4294967295, %s646_s21   ;;  %p598_p0 = scmp.ge.s32.totalorder %s646_s21, 1  ;;  %s646_s21 = sphi %s684_s21, %s17_s21  }
   0x2   : > { %p217_p1 = scmp.lt.s32.totalorder %s646_s21, 3 }
   0x4   : > { %p218_p2 = pnand %p598_p0, %p217_p1 }
   0x5   : > { %v300_v0 = vld [vmem:[%s744_s2] sm:$0xff] (!%p218_p2)  ;;  %v648_v2 = vmov (!%p218_p2), 0   ;;  %v301_v3 = vld [vmem:[%s744_s2 + $0x8] sm:$0xff] (!%p218_p2)  ;;  %p257_p3 = scmp.lt.s32.totalorder (!%p218_p2), %s594_s22, 1  ;;  %vm336_vm0 = vcmask (!%p218_p2), 130048   ;;  %vm444_vm1 = vcmask (!%p218_p2), 7168  }
   0x6   : > { %221 = sbr.rel (%p218_p2) target bundleno = 531 (0x213), region = 36  ;;  %v284_v1 = vld [vmem:[%s743_s1] sm:$0xff] (!%p218_p2)  ;;  %637 = vset.pattern.permute.xlu1 (!%p218_p2), %v648_v2  ;;  %636 = vset.pattern.permute.xlu0 (!%p218_p2), %v648_v2  ;;  %v285_v4 = vld [vmem:[%s743_s1 + $0x8] sm:$0xff] (!%p218_p2) }
   0x7   : > { %304 = vperm.xlu1 (!%p218_p2), %637, %v300_v0   ;;  %288 = vperm.xlu0 (!%p218_p2), %636, %v284_v1   ;;  %v638_v29 = vld [vmem:[%s745_s3] sm:$0xff] (!%p218_p2)   ;;  %v639_v30 = vld [vmem:[%s745_s3 + $0x8] sm:$0xff] (!%p218_p2)  }
   0x8   : > { %375 = vmatprep.mubr.bf16.mxu0 (!%p218_p2), %v648_v2  ;;  %385 = vmatprep.mubr.bf16.mxu1 (!%p218_p2), %v648_v2 }
   0xb   : > { %309 = vperm.xlu1 (!%p218_p2), %637, %v301_v3   ;;  %293 = vperm.xlu0 (!%p218_p2), %636, %v285_v4  }
   0xd   : > { %s750_s22 = smov (!%p257_p3, %s594_s22), 1 }
   0xe   : > { %s617_s7 = sshll.u32 %s750_s22, 4  ;;  %s717_s15 = sshll.u32 %s750_s22, 5 }
   0xf   : > { %s261_s10 = scalar_lea.vmem %s742_s0, %s617_s7  ;;  %s266_s18 = scalar_lea.vmem %s746_s4, %s717_s15 }
  0x10   : > { %v278_v5 = vld [vmem:[%s261_s10] sm:$0xff]  ;;  %v279_v8 = vld [vmem:[%s261_s10 + $0x8] sm:$0xff]  ;;  %s271_s22 = scalar_lea.vmem %s747_s5, %s717_s15  ;;  %s276_s25 = scalar_lea.vmem %s748_s6, %s717_s15 }
  0x11   : > { %v280_v6 = vunpack.c.l.bf16 %v278_v5  ;;  %v281_v7 = vunpack.c.h.bf16 %v278_v5  ;;  %v282_v13 = vunpack.c.l.bf16 %v279_v8  ;;  %v283_v14 = vunpack.c.h.bf16 %v279_v8 }
  0x86   : > { %v305_v9 = vpop.permute.xlu1 %304  ;;  %v289_v10 = vpop.permute.xlu0 %288 }
  0x87   : > { %v296_v11 = vmul.f32 %v289_v10, %v280_v6  ;;  %v297_v12 = vmul.f32 %v289_v10, %v281_v7 }
  0x89   : > { %v312_v16 = vadd.f32 %v305_v9, %v296_v11  ;;  %v313_v17 = vadd.f32 %v305_v9, %v297_v12 }
  0x8a   : > { %v294_v15 = vpop.permute.xlu0 %293  ;;  %v310_v20 = vpop.permute.xlu1 %309 }
  0x8b   : > { %v298_v18 = vmul.f32 %v294_v15, %v282_v13  ;;  %v299_v19 = vmul.f32 %v294_v15, %v283_v14  ;;  %v317_v23 = vmax.f32 %v313_v17, 0.0  ;;  %v316_v25 = vmax.f32 %v312_v16, 0.0 }
  0x8d   : > { %v314_v21 = vadd.f32 %v310_v20, %v298_v18  ;;  %v315_v22 = vadd.f32 %v310_v20, %v299_v19 }
  0x8f   : > { %v319_v24 = vmax.f32 %v315_v22, 0.0  ;;  %v318_v26 = vmax.f32 %v314_v21, 0.0 }
  0x91   : > { %v325_v27 = vpack.c.bf16 %v319_v24, %v317_v23  ;;  %v324_v28 = vpack.c.bf16 %v318_v26, %v316_v25 }
  0x93   : > { %343 = vmatprep.subr.bf16.mxu0 %v325_v27  ;;  %625 = vmatprep.subr.bf16.mxu1 %v325_v27 }
  0x94   : > { %344 = vmatpush1.bf16.msra.mxu0 %v324_v28  ;;  %626 = vmatpush1.bf16.msra.mxu1 %v324_v28 }
  0x97   : > { %609 = vmatmul.mubr.msk.bf16.vlgmr.msra.gmra.mrb[0].mxu0 %vm336_vm0, %v638_v29  ;;  %610 = vmatmul.mubr.msk.bf16.vlgmr.msra.gmra.mrb[0].mxu1 %vm336_vm0, %v639_v30 }
 0x16a   : > { %v377_v31 = vpop.f32.mrb[0].mxu0  ;;  %v387_v32 = vpop.f32.mrb[0].mxu1 }
 0x16b   : > { %v379_v33 = vpop.f32.mrb[1].mxu0  ;;  %v389_v34 = vpop.f32.mrb[1].mxu1 }
 0x16c   : > { %v621_v35 = vpack.c.bf16 %v379_v33, %v377_v31  ;;  %v381_v36 = vpop.f32.mrb[2].mxu0  ;;  %v623_v37 = vpack.c.bf16 %v389_v34, %v387_v32  ;;  %v391_v38 = vpop.f32.mrb[2].mxu1 }
 0x16d   : > { %v396_v39 = vpack.c.bf16 %v381_v36, %v377_v31  ;;  %v383_v40 = vpop.f32.mrb[3].mxu0  ;;  %v398_v41 = vpack.c.bf16 %v391_v38, %v387_v32  ;;  %v393_v42 = vpop.f32.mrb[3].mxu1 }
 0x16e   : > { %420 = vst [vmem:[%s266_s18] sm:$0xff] %v621_v35  ;;  %422 = vst [vmem:[%s266_s18 + $0x10] sm:$0xff] %v623_v37  ;;  %v397_v43 = vpack.c.bf16 %v383_v40, %v379_v33  ;;  %v622_v44 = vpack.c.bf16 %v383_v40, %v381_v36  ;;  %v399_v45 = vpack.c.bf16 %v393_v42, %v389_v34 }
 0x16f   : > { %v624_v46 = vpack.c.bf16 %v393_v42, %v391_v38  ;;  %v426_v47 = vunpack.c.h.bf16 %v396_v39  ;;  %v424_v48 = vunpack.c.l.bf16 %v396_v39  ;;  %v428_v49 = vunpack.c.l.bf16 %v398_v41 }
 0x170   : > { %v430_v50 = vunpack.c.h.bf16 %v398_v41  ;;  %421 = vst [vmem:[%s266_s18 + $0x8] sm:$0xff] %v622_v44  ;;  %v425_v51 = vunpack.c.l.bf16 %v397_v43  ;;  %v427_v52 = vunpack.c.h.bf16 %v397_v43  ;;  %v429_v53 = vunpack.c.l.bf16 %v399_v45 }
 0x171   : > { %423 = vst [vmem:[%s266_s18 + $0x18] sm:$0xff] %v624_v46  ;;  %v431_v54 = vunpack.c.h.bf16 %v399_v45  ;;  %v449_v55 = vmul.f32 %v424_v48, %v424_v48  ;;  %v453_v56 = vmul.f32 %v428_v49, %v428_v49  ;;  %v451_v57 = vmul.f32 %v426_v47, %v426_v47 }
 0x172   : > { %v455_v58 = vmul.f32 %v430_v50, %v430_v50  ;;  %v435_v59 = vadd.f32 %v427_v52, %v426_v47  ;;  %v432_v60 = vadd.f32 %v425_v51, %v424_v48  ;;  %v450_v61 = vmul.f32 %v425_v51, %v425_v51 }
 0x173   : > { %v438_v62 = vadd.f32 %v429_v53, %v428_v49  ;;  %v454_v63 = vmul.f32 %v429_v53, %v429_v53  ;;  %v441_v0 = vadd.f32 %v431_v54, %v430_v50  ;;  %v452_v1 = vmul.f32 %v427_v52, %v427_v52 }
 0x174   : > { %v456_v2 = vmul.f32 %v431_v54, %v431_v54  ;;  %436 = vadd.xlane.f32.xlu1 %v435_v59  ;;  %433 = vadd.xlane.f32.xlu0 %v432_v60  ;;  %v457_v3 = vadd.f32 %v450_v61, %v449_v55 }
 0x175   : > { %v463_v4 = vadd.f32 %v454_v63, %v453_v56  ;;  %v460_v5 = vadd.f32 %v452_v1, %v451_v57 }
 0x176   : > { %v466_v6 = vadd.f32 %v456_v2, %v455_v58 }
 0x178   : > { %458 = vadd.xlane.f32.xlu1 %v457_v3  ;;  %439 = vadd.xlane.f32.xlu0 %v438_v62 }
 0x17c   : > { %464 = vadd.xlane.f32.xlu1 %v463_v4  ;;  %442 = vadd.xlane.f32.xlu0 %v441_v0 }
 0x180   : > { %461 = vadd.xlane.f32.xlu0 %v460_v5 }
 0x184   : > { %467 = vadd.xlane.f32.xlu0 %v466_v6 }
 0x201   : > { %v437_v7 = vpop.xlane.xlu1 %436  ;;  %v434_v8 = vpop.xlane.xlu0 %433 }
 0x202   : > { %446 = vst.msk [vmem:[%s271_s22 + $0x8] sm:$0xff] %vm444_vm1, %v437_v7  ;;  %445 = vst.msk [vmem:[%s271_s22] sm:$0xff] %vm444_vm1, %v434_v8 }
 0x205   : > { %v459_v9 = vpop.xlane.xlu1 %458  ;;  %v440_v10 = vpop.xlane.xlu0 %439 }
 0x206   : > { %469 = vst.msk [vmem:[%s276_s25] sm:$0xff] %vm444_vm1, %v459_v9  ;;  %447 = vst.msk [vmem:[%s271_s22 + $0x10] sm:$0xff] %vm444_vm1, %v440_v10 }
 0x209   : > { %v465_v11 = vpop.xlane.xlu1 %464  ;;  %v443_v12 = vpop.xlane.xlu0 %442 }
 0x20a   : > { %471 = vst.msk [vmem:[%s276_s25 + $0x10] sm:$0xff] %vm444_vm1, %v465_v11  ;;  %448 = vst.msk [vmem:[%s271_s22 + $0x18] sm:$0xff] %vm444_vm1, %v443_v12 }
 0x20d   : > { %v462_v13 = vpop.xlane.xlu0 %461 }
 0x20e   : > { %470 = vst.msk [vmem:[%s276_s25 + $0x8] sm:$0xff] %vm444_vm1, %v462_v13 }
 0x211   : > { %v468_v14 = vpop.xlane.xlu0 %467 }
 0x212   : > { %472 = vst.msk [vmem:[%s276_s25 + $0x18] sm:$0xff] %vm444_vm1, %v468_v14 }
 0x213 PF: > { %s17_s21 = sadd.s32 1, %s646_s21  }
 0x214   : > { %p14_p4 = scmp.ge.s32.totalorder %s17_s21, 4  }
 0x216   :  { %16 = sbr.rel (!%p14_p4) target bundleno = 1 (0x1), region = 90 }

// kernel: bottleneck_forward.5
= control target key start
LH: loop header
LB: loop body
LE: loop exit
PB: predicated region body
PF: predicated region fallthrough
CT: control target
= control target key end

     0   :  { %s1022_s21 = smov 0   ;;  %s1206_s0 = inlined_call_operand.vmem [shape: bf16[2,16,256], index: 0, kind: input, shape index: {}]   ;;  %s1207_s1 = inlined_call_operand.vmem [shape: f32[16,1], index: 1, kind: input, shape index: {}]   ;;  %s1208_s2 = inlined_call_operand.vmem [shape: f32[16,1], index: 2, kind: input, shape index: {}]   ;;  %s1209_s3 = inlined_call_operand.vmem [shape: bf16[3,16,48], index: 3, kind: input, shape index: {}]   ;;  %s1210_s4 = inlined_call_operand.vmem [shape: bf16[2,16,256], index: 4, kind: output, shape index: {0}]   ;;  %s1211_s5 = inlined_call_operand.vmem [shape: f32[2,16,1], index: 5, kind: output, shape index: {1}]   ;;  %s1212_s6 = inlined_call_operand.vmem [shape: f32[2,16,1], index: 6, kind: output, shape index: {2}]  }
   0x1 LB: > { %s904_s22 = sadd.s32 4294967295, %s977_s21   ;;  %p908_p0 = scmp.ge.s32.totalorder %s977_s21, 1  ;;  %s977_s21 = sphi %s1022_s21, %s17_s21  }
   0x2   : > { %p217_p1 = scmp.lt.s32.totalorder %s977_s21, 3 }
   0x4   : > { %p218_p2 = pnand %p908_p0, %p217_p1 }
   0x5   : > { %v302_v0 = vld [vmem:[%s1208_s2] sm:$0xff] (!%p218_p2)  ;;  %v324_v2 = vlaneseq (!%p218_p2)  ;;  %v979_v3 = vmov (!%p218_p2), 0   ;;  %v303_v4 = vld [vmem:[%s1208_s2 + $0x8] sm:$0xff] (!%p218_p2)  ;;  %s980_s7 = smov (!%p218_p2), 113   ;;  %s981_s8 = smov (!%p218_p2), 1   ;;  %vm397_vm6 = vcmask (!%p218_p2), 924672  }
   0x6   : > { %221 = sbr.rel (%p218_p2) target bundleno = 798 (0x31e), region = 36  ;;  %v286_v1 = vld [vmem:[%s1207_s1] sm:$0xff] (!%p218_p2)  ;;  %962 = vset.pattern.permute.xlu1 (!%p218_p2), %v979_v3  ;;  %961 = vset.pattern.permute.xlu0 (!%p218_p2), %v979_v3  ;;  %v287_v6 = vld [vmem:[%s1207_s1 + $0x8] sm:$0xff] (!%p218_p2)  ;;  %s982_s9 = smov (!%p218_p2), 17   ;;  %vm441_vm9 = vcmask (!%p218_p2), 7168   ;;  %vm567_vm10 = vcmask (!%p218_p2), 138240  }
   0x7   : > { %306 = vperm.xlu1 (!%p218_p2), %962, %v302_v0   ;;  %290 = vperm.xlu0 (!%p218_p2), %961, %v286_v1   ;;  %v325_v5 = vand.u32 (!%p218_p2), 127, %v324_v2  ;;  %v362_v7 = vshrl.u32 (!%p218_p2), %v324_v2, 7  ;;  %s983_s10 = smov (!%p218_p2), 111   ;;  %s984_s11 = smov (!%p218_p2), 126   ;;  %vm373_vm15 = vcmask (!%p218_p2), 908288  }
   0x8   : > { %615 = vmatprep.mubr.bf16.mxu0 (!%p218_p2), %v979_v3  ;;  %531 = vmatprep.mubr.bf16.mxu1 (!%p218_p2), %v979_v3  ;;  %s985_s12 = smov (!%p218_p2), 127   ;;  %p257_p3 = scmp.lt.s32.totalorder (!%p218_p2), %s904_s22, 1 }
   0x9   : > { %v326_v8 = vadd.s32 (!%p218_p2), 128, %v325_v5  ;;  %v331_v9 = vand.u32 (!%p218_p2), 15, %v325_v5  ;;  %v367_v11 = vsub.s32 (!%p218_p2), 4, %v362_v7  ;;  %v363_v12 = vsub.s32 (!%p218_p2), 0, %v362_v7  ;;  %s986_s17 = smov (!%p218_p2), 15  }
   0xb   : > { %311 = vperm.xlu1 (!%p218_p2), %962, %v303_v4   ;;  %295 = vperm.xlu0 (!%p218_p2), %961, %v287_v6   ;;  %v338_v10 = vand.u32 (!%p218_p2), 15, %v326_v8  ;;  %vm353_vm0 = vcmp.lt.s32.totalorder (!%p218_p2), %v331_v9, 15  ;;  %vm351_vm3 = vcmp.gt.s32.totalorder (!%p218_p2), %v331_v9, 0 }
   0xd   : > { %vm354_vm1 = vcmp.lt.s32.totalorder %v338_v10, 15  ;;  %vm352_vm4 = vcmp.gt.s32.totalorder %v338_v10, 0  ;;  %s1214_s22 = smov (!%p257_p3, %s904_s22), 1 }
   0xe   : > { %vm383_vm2 = vmpackc.low %vm354_vm1, %vm353_vm0  ;;  %s1064_s13 = sshll.u32 %s1214_s22, 4  ;;  %vm414_vm0 = vcmask 1039360  }
   0xf   : > { %v384_v13 = vsel %vm383_vm2, 65537, %v979_v3  ;;  %vm359_vm5 = vmpackc.low %vm352_vm4, %vm351_vm3  ;;  %s261_s16 = scalar_lea.vmem %s1206_s0, %s1064_s13  ;;  %s266_s27 = scalar_lea.vmem %s1210_s4, %s1064_s13 }
  0x10   : > { %v392_v14 = vrot.slane %v384_v13, %v367_v11  ;;  %v388_v15 = vrot.slane %v384_v13, %v363_v12  ;;  %v360_v16 = vsel %vm359_vm5, 65537, %v979_v3  ;;  %v280_v19 = vld [vmem:[%s261_s16] sm:$0xff]  ;;  %v281_v22 = vld [vmem:[%s261_s16 + $0x8] sm:$0xff]  ;;  %vm630_vm5 = vcmask 121856   ;;  %s271_s30 = scalar_lea.vmem %s1211_s5, %s1064_s13 }
  0x11   : > { %v368_v17 = vrot.slane %v360_v16, %v367_v11  ;;  %v364_v18 = vrot.slane %v360_v16, %v363_v12  ;;  %v282_v20 = vunpack.c.l.bf16 %v280_v19  ;;  %v283_v21 = vunpack.c.h.bf16 %v280_v19 }
  0x12   : > { %395 = vrot.lane.b32.xlu1 %v392_v14, %s980_s7  ;;  %393 = vrot.lane.b32.xlu0 %v388_v15, %s980_s7  ;;  %v284_v27 = vunpack.c.l.bf16 %v281_v22  ;;  %v285_v28 = vunpack.c.h.bf16 %v281_v22 }
  0x16   : > { %439 = vrot.lane.b32.xlu1 %v392_v14, %s981_s8  ;;  %437 = vrot.lane.b32.xlu0 %v388_v15, %s981_s8 }
  0x1a   : > { %638 = vrot.lane.b32.xlu1 %v392_v14, %s982_s9  ;;  %636 = vrot.lane.b32.xlu0 %v388_v15, %s982_s9 }
  0x1e   : > { %371 = vrot.lane.b32.xlu1 %v368_v17, %s983_s10  ;;  %369 = vrot.lane.b32.xlu0 %v364_v18, %s983_s10 }
  0x22   : > { %419 = vrot.lane.b32.xlu1 %v979_v3, %s984_s11  ;;  %408 = vrot.lane.b32.xlu0 %v979_v3, %s985_s12 }
  0x26   : > { %430 = vrot.lane.b32.xlu1 %v368_v17, %s985_s12  ;;  %428 = vrot.lane.b32.xlu0 %v364_v18, %s985_s12 }
  0x86   : > { %v307_v23 = vpop.permute.xlu1 %306  ;;  %v291_v24 = vpop.permute.xlu0 %290 }
  0x87   : > { %v298_v25 = vmul.f32 %v291_v24, %v282_v20  ;;  %v299_v26 = vmul.f32 %v291_v24, %v283_v21 }
  0x89   : > { %v314_v31 = vadd.f32 %v307_v23, %v298_v25  ;;  %v315_v32 = vadd.f32 %v307_v23, %v299_v26 }
  0x8a   : > { %v312_v29 = vpop.permute.xlu1 %311  ;;  %v296_v30 = vpop.permute.xlu0 %295 }
  0x8b   : > { %v300_v33 = vmul.f32 %v296_v30, %v284_v27  ;;  %v301_v34 = vmul.f32 %v296_v30, %v285_v28  ;;  %v318_v39 = vmax.f32 %v314_v31, 0.0  ;;  %v319_v40 = vmax.f32 %v315_v32, 0.0 }
  0x8d   : > { %v316_v35 = vadd.f32 %v312_v29, %v300_v33  ;;  %v317_v36 = vadd.f32 %v312_v29, %v301_v34 }
  0x8e   : > { %v396_v37 = vpop.permute.xlu1 %395  ;;  %v394_v38 = vpop.permute.xlu0 %393 }
  0x8f   : > { %v320_v41 = vmax.f32 %v316_v35, 0.0  ;;  %v321_v42 = vmax.f32 %v317_v36, 0.0  ;;  %v398_v43 = vsel %vm397_vm6, %v394_v38, %v396_v37  ;;  %vm400_vm7 = vcmp.ne.s16.totalorder %v396_v37, 0 }
  0x90   : > { %vm399_vm8 = vcmp.ne.s16.totalorder %v398_v43, 0 }
  0x91   : > { %v1071_v44 = vpack.c.bf16 %v320_v41, %v318_v39  ;;  %v1073_v45 = vpack.c.bf16 %v321_v42, %v319_v40 }
  0x92   : > { %v440_v46 = vpop.permute.xlu1 %439  ;;  %v438_v47 = vpop.permute.xlu0 %437 }
  0x93   : > { %412 = vrot.lane.b32.xlu1 %v1073_v45, %s985_s12  ;;  %410 = vrot.lane.b32.xlu0 %v1071_v44, %s985_s12  ;;  %v402_v48 = vsel %vm400_vm7, %v1073_v45, 0  ;;  %v401_v49 = vsel %vm399_vm8, %v1071_v44, 0  ;;  %v442_v52 = vsel %vm441_vm9, %v438_v47, %v440_v46  ;;  %vm443_vm11 = vcmp.ne.s16.totalorder %v438_v47, 0 }
  0x94   : > { %vm444_vm12 = vcmp.ne.s16.totalorder %v442_v52, 0  ;;  %v445_v56 = vsel %vm443_vm11, %v1071_v44, 0  ;;  %vm425_vm11 = vcmask 1031168  }
  0x95   : > { %v446_v57 = vsel %vm444_vm12, %v1073_v45, 0  ;;  %vm495_vm12 = vcmask 392192  }
  0x96   : > { %v639_v50 = vpop.permute.xlu1 %638  ;;  %v637_v51 = vpop.permute.xlu0 %636 }
  0x97   : > { %423 = vrot.lane.b32.xlu0 %v402_v48, %s984_s11  ;;  %421 = vrot.lane.b32.xlu1 %v401_v49, %s984_s11  ;;  %v640_v53 = vsel %vm567_vm10, %v637_v51, %v639_v50  ;;  %vm641_vm13 = vcmp.ne.s16.totalorder %v637_v51, 0 }
  0x98   : > { %vm642_vm14 = vcmp.ne.s16.totalorder %v640_v53, 0  ;;  %v643_v59 = vsel %vm641_vm13, %v1071_v44, 0 }
  0x99   : > { %v644_v58 = vsel %vm642_vm14, %v1073_v45, 0 }
  0x9a   : > { %v372_v54 = vpop.permute.xlu1 %371  ;;  %v370_v55 = vpop.permute.xlu0 %369 }
  0x9b   : > { %626 = vrot.lane.b32.xlu0 %v364_v18, %s986_s17  ;;  %628 = vrot.lane.b32.xlu1 %v368_v17, %s986_s17  ;;  %v374_v63 = vsel %vm373_vm15, %v370_v55, %v372_v54  ;;  %vm376_vm1 = vcmp.ne.s16.totalorder %v372_v54, 0 }
  0x9c   : > { %vm375_vm2 = vcmp.ne.s16.totalorder %v374_v63, 0  ;;  %v378_v4 = vsel %vm376_vm1, %v1073_v45, 0 }
  0x9d   : > { %v377_v5 = vsel %vm375_vm2, %v1071_v44, 0 }
  0x9e   : > { %v1091_v60 = vpop.permute.xlu1 %419  ;;  %v1093_v61 = vpop.permute.xlu0 %408 }
  0x9f   : > { %452 = vrot.lane.b32.xlu0 %v445_v56, %s984_s11  ;;  %454 = vrot.lane.b32.xlu1 %v446_v57, %s984_s11  ;;  %v963_v62 = vpack.i.bf16 %v1093_v61, %v979_v3 }
  0xa2   : > { %v431_v0 = vpop.permute.xlu1 %430  ;;  %v429_v1 = vpop.permute.xlu0 %428 }
  0xa3   : > { %653 = vrot.lane.b32.xlu0 %v644_v58, %s984_s11  ;;  %651 = vrot.lane.b32.xlu1 %v643_v59, %s984_s11  ;;  %v432_v2 = vsel %vm414_vm0, %v429_v1, %v431_v0  ;;  %vm434_vm3 = vcmp.ne.s16.totalorder %v431_v0, 0 }
  0xa4   : > { %vm433_vm4 = vcmp.ne.s16.totalorder %v432_v2, 0  ;;  %v436_v7 = vsel %vm434_vm3, %v1073_v45, 0 }
  0xa5   : > { %v435_v6 = vsel %vm433_vm4, %v1071_v44, 0 }
  0xa7   : > { %549 = vrot.lane.b32.xlu0 %v979_v3, %s982_s9  ;;  %465 = vrot.lane.b32.xlu1 %v979_v3, %s981_s8 }
  0xab   : > { %964 = vrot.lane.b32.xlu0 %v963_v62, %s980_s7  ;;  %680 = vrot.lane.b32.xlu1 %v1091_v60, %s980_s7 }
  0xaf   : > { %553 = vrot.lane.b32.xlu1 %v378_v4, %s982_s9  ;;  %551 = vrot.lane.b32.xlu0 %v377_v5, %s982_s9 }
  0xb3   : > { %467 = vrot.lane.b32.xlu1 %v435_v6, %s981_s8  ;;  %469 = vrot.lane.b32.xlu0 %v436_v7, %s981_s8 }
 0x105   : > { %v413_v8 = vpop.permute.xlu1 %412  ;;  %v411_v9 = vpop.permute.xlu0 %410 }
 0x106   : > { %v416_v19 = vsel %vm414_vm0, %v411_v9, %v413_v8  ;;  %v415_v22 = vsel %vm414_vm0, %v1093_v61, %v411_v9  ;;  %v648_v33 = vsel %vm414_vm0, %v413_v8, %v1093_v61  ;;  %v968_v61 = vld [vmem:[%s1209_s3] sm:$0xff]  }
 0x109   : > { %v424_v10 = vpop.permute.xlu0 %423  ;;  %v422_v11 = vpop.permute.xlu1 %421 }
 0x10a   : > { %v427_v27 = vsel %vm425_vm11, %v422_v11, %v424_v10  ;;  %v426_v32 = vsel %vm425_vm11, %v1091_v60, %v422_v11 }
 0x10d   : > { %v627_v12 = vpop.permute.xlu0 %626  ;;  %v629_v13 = vpop.permute.xlu1 %628 }
 0x10e   : > { %vm632_vm7 = vcmp.ne.s16.totalorder %v627_v12, 0  ;;  %v631_v14 = vsel %vm630_vm5, %v627_v12, %v629_v13 }
 0x10f   : > { %vm633_vm8 = vcmp.ne.s16.totalorder %v631_v14, 0  ;;  %v634_v15 = vsel %vm632_vm7, %v1071_v44, 0  ;;  %v970_v14 = vld [vmem:[%s1209_s3 + $0x10] sm:$0xff]  }
 0x110   : > { %664 = vrot.lane.b32.xlu0 %v634_v15, %s980_s7  ;;  %v635_v16 = vsel %vm633_vm8, %v1073_v45, 0 }
 0x111   : > { %v453_v17 = vpop.permute.xlu0 %452  ;;  %666 = vrot.lane.b32.xlu1 %v635_v16, %s980_s7  ;;  %v455_v18 = vpop.permute.xlu1 %454 }
 0x112   : > { %v456_v38 = vsel %vm425_vm11, %v453_v17, %v455_v18  ;;  %v457_v40 = vsel %vm425_vm11, %v455_v18, %v1091_v60 }
 0x114   : > { %559 = vrot.lane.b32.xlu0 %v413_v8, %s982_s9 }
 0x115   : > { %v654_v20 = vpop.permute.xlu0 %653  ;;  %557 = vrot.lane.b32.xlu1 %v416_v19, %s982_s9  ;;  %v652_v21 = vpop.permute.xlu1 %651 }
 0x116   : > { %v656_v39 = vsel %vm425_vm11, %v654_v20, %v1091_v60  ;;  %v655_v41 = vsel %vm425_vm11, %v652_v21, %v654_v20 }
 0x118   : > { %475 = vrot.lane.b32.xlu0 %v413_v8, %s981_s8 }
 0x119   : > { %v550_v23 = vpop.permute.xlu0 %549  ;;  %555 = vrot.lane.b32.xlu1 %v415_v22, %s982_s9  ;;  %v466_v24 = vpop.permute.xlu1 %465 }
 0x11c   : > { %471 = vrot.lane.b32.xlu0 %v411_v9, %s981_s8 }
 0x11d   : > { %v1127_v25 = vpop.permute.xlu0 %964  ;;  %565 = vrot.lane.b32.xlu1 %v424_v10, %s982_s9  ;;  %v1130_v26 = vpop.permute.xlu1 %680 }
 0x11e   : > { %v966_v57 = vunpack.i.l.bf16 %v1127_v25  ;;  %v967_v63 = vunpack.i.h.bf16 %v1127_v25 }
 0x120   : > { %563 = vrot.lane.b32.xlu0 %v427_v27, %s982_s9 }
 0x121   : > { %473 = vrot.lane.b32.xlu1 %v416_v19, %s981_s8  ;;  %v554_v28 = vpop.permute.xlu1 %553  ;;  %v552_v29 = vpop.permute.xlu0 %551 }
 0x122   : > { %v569_v30 = vsel %vm567_vm10, %v552_v29, %v554_v28  ;;  %v568_v31 = vsel %vm567_vm10, %v550_v23, %v552_v29 }
 0x123   : > { %583 = vmatprep.subr.bf16.mxu0 %v569_v30 }
 0x124   : > { %561 = vrot.lane.b32.xlu0 %v426_v32, %s982_s9  ;;  %584 = vmatpush1.bf16.msra.mxu0 %v568_v31  ;;  %s276_s9 = scalar_lea.vmem %s1212_s6, %s1064_s13 }
 0x125   : > { %672 = vrot.lane.b32.xlu1 %v648_v33, %s980_s7  ;;  %v468_v34 = vpop.permute.xlu1 %467  ;;  %v470_v35 = vpop.permute.xlu0 %469 }
 0x126   : > { %v484_v36 = vsel %vm441_vm9, %v468_v34, %v470_v35  ;;  %v483_v37 = vsel %vm441_vm9, %v466_v24, %v468_v34 }
 0x127   : > { %499 = vmatprep.subr.bf16.mxu1 %v484_v36 }
 0x128   : > { %479 = vrot.lane.b32.xlu0 %v456_v38, %s981_s8  ;;  %500 = vmatpush1.bf16.msra.mxu1 %v483_v37 }
 0x129   : > { %670 = vrot.lane.b32.xlu1 %v416_v19, %s980_s7 }
 0x12c   : > { %678 = vrot.lane.b32.xlu0 %v656_v39, %s980_s7 }
 0x12d   : > { %481 = vrot.lane.b32.xlu1 %v457_v40, %s981_s8 }
 0x130   : > { %477 = vrot.lane.b32.xlu0 %v453_v17, %s981_s8 }
 0x131   : > { %676 = vrot.lane.b32.xlu1 %v655_v41, %s980_s7 }
 0x182   : > { %v665_v42 = vpop.permute.xlu0 %664 }
 0x183   : > { %v667_v43 = vpop.permute.xlu1 %666 }
 0x184   : > { %v683_v62 = vsel %vm397_vm6, %v667_v43, %v966_v57  ;;  %v682_v1 = vsel %vm397_vm6, %v665_v42, %v667_v43 }
 0x186   : > { %v560_v44 = vpop.permute.xlu0 %559 }
 0x187   : > { %v558_v45 = vpop.permute.xlu1 %557 }
 0x188   : > { %v571_v46 = vsel %vm567_vm10, %v558_v45, %v560_v44 }
 0x189   : > { %585 = vmatprep.subr.bf16.mxu0 %v571_v46 }
 0x18a   : > { %v476_v47 = vpop.permute.xlu0 %475 }
 0x18b   : > { %v556_v48 = vpop.permute.xlu1 %555 }
 0x18c   : > { %v570_v49 = vsel %vm567_vm10, %v556_v48, %v558_v45 }
 0x18d   : > { %586 = vmatpush1.bf16.msra.mxu0 %v570_v49 }
 0x18e   : > { %v472_v50 = vpop.permute.xlu0 %471 }
 0x18f   : > { %v566_v51 = vpop.permute.xlu1 %565 }
 0x192   : > { %v564_v52 = vpop.permute.xlu0 %563 }
 0x193   : > { %v474_v53 = vpop.permute.xlu1 %473  ;;  %v573_v54 = vsel %vm567_vm10, %v564_v52, %v566_v51 }
 0x194   : > { %587 = vmatprep.subr.bf16.mxu0 %v573_v54  ;;  %v486_v55 = vsel %vm441_vm9, %v474_v53, %v476_v47  ;;  %v485_v56 = vsel %vm441_vm9, %v472_v50, %v474_v53 }
 0x195   : > { %501 = vmatprep.subr.bf16.mxu1 %v486_v55 }
 0x196   : > { %502 = vmatpush1.bf16.msra.mxu1 %v485_v56  ;;  %v562_v58 = vpop.permute.xlu0 %561 }
 0x197   : > { %v673_v59 = vpop.permute.xlu1 %672  ;;  %v572_v60 = vsel %vm567_vm10, %v562_v58, %v564_v52 }
 0x198   : > { %588 = vmatpush1.bf16.msra.mxu0 %v572_v60  ;;  %v685_v4 = vsel %vm397_vm6, %v673_v59, %v967_v63 }
 0x199   : > { %697 = vmatprep.subr.bf16.mxu0 %v683_v62 }
 0x19a   : > { %v480_v0 = vpop.permute.xlu0 %479 }
 0x19b   : > { %v671_v2 = vpop.permute.xlu1 %670  ;;  %922 = vmatmul.mubr.msk.bf16.vlgmr.msra.gmra.mrb[0].mxu0 %vm495_vm12, %v968_v61 }
 0x19c   : > { %698 = vmatpush1.bf16.msra.mxu0 %v682_v1  ;;  %729 = vmatprep.mubr.bf16.mxu0 %v979_v3  ;;  %v684_v6 = vsel %vm397_vm6, %v671_v2, %v673_v59  ;;  %v969_v3 = vld [vmem:[%s1209_s3 + $0x8] sm:$0xff]  }
 0x19d   : > { %699 = vmatprep.subr.bf16.mxu0 %v685_v4 }
 0x19e   : > { %v679_v5 = vpop.permute.xlu0 %678 }
 0x19f   : > { %v482_v7 = vpop.permute.xlu1 %481  ;;  %v687_v8 = vsel %vm397_vm6, %v679_v5, %v1130_v26 }
 0x1a0   : > { %700 = vmatpush1.bf16.msra.mxu0 %v684_v6  ;;  %v488_v9 = vsel %vm441_vm9, %v480_v0, %v482_v7 }
 0x1a1   : > { %503 = vmatprep.subr.bf16.mxu1 %v488_v9  ;;  %701 = vmatprep.subr.bf16.mxu0 %v687_v8 }
 0x1a2   : > { %v478_v10 = vpop.permute.xlu0 %477 }
 0x1a3   : > { %v677_v11 = vpop.permute.xlu1 %676  ;;  %v487_v12 = vsel %vm441_vm9, %v478_v10, %v480_v0 }
 0x1a4   : > { %v686_v13 = vsel %vm397_vm6, %v677_v11, %v679_v5  ;;  %504 = vmatpush1.bf16.msra.mxu1 %v487_v12 }
 0x1a5   : > { %702 = vmatpush1.bf16.msra.mxu0 %v686_v13 }
 0x1a7   : > { %920 = vmatmul.mubr.msk.bf16.vlgmr.msra.gmra.mrb[0].mxu1 %vm495_vm12, %v969_v3 }
 0x1a8   : > { %926 = vmatmul.mubr.msk.bf16.vlgmr.msra.gmra.mrb[0].mxu0 %vm495_vm12, %v970_v14 }
 0x27a   : > { %v533_v15 = vpop.f32.mrb[0].mxu1 }
 0x27b   : > { %v535_v16 = vpop.f32.mrb[1].mxu1  ;;  %v731_v17 = vpop.f32.mrb[0].mxu0 }
 0x27c   : > { %v937_v18 = vadd.f32 %v731_v17, %v533_v15  ;;  %v537_v19 = vpop.f32.mrb[2].mxu1  ;;  %v733_v20 = vpop.f32.mrb[1].mxu0 }
 0x27d   : > { %v938_v21 = vadd.f32 %v733_v20, %v535_v16  ;;  %v539_v22 = vpop.f32.mrb[3].mxu1  ;;  %v735_v23 = vpop.f32.mrb[2].mxu0 }
 0x27e   : > { %v939_v24 = vadd.f32 %v735_v23, %v537_v19  ;;  %v737_v25 = vpop.f32.mrb[3].mxu0 }
 0x27f   : > { %v935_v26 = vpack.c.bf16 %v938_v21, %v937_v18  ;;  %v940_v27 = vadd.f32 %v737_v25, %v539_v22 }
 0x280   : > { %v744_v28 = vpack.c.bf16 %v939_v24, %v937_v18 }
 0x281   : > { %756 = vst [vmem:[%s266_s27] sm:$0xff] %v935_v26  ;;  %v745_v29 = vpack.c.bf16 %v940_v27, %v938_v21  ;;  %v936_v30 = vpack.c.bf16 %v940_v27, %v939_v24 }
 0x282   : > { %v760_v31 = vunpack.c.h.bf16 %v744_v28  ;;  %v758_v32 = vunpack.c.l.bf16 %v744_v28 }
 0x283   : > { %757 = vst [vmem:[%s266_s27 + $0x8] sm:$0xff] %v936_v30  ;;  %v761_v33 = vunpack.c.h.bf16 %v745_v29  ;;  %v759_v34 = vunpack.c.l.bf16 %v745_v29 }
 0x284   : > { %v771_v35 = vmul.f32 %v758_v32, %v758_v32  ;;  %v773_v36 = vmul.f32 %v760_v31, %v760_v31 }
 0x285   : > { %v765_v37 = vadd.f32 %v761_v33, %v760_v31  ;;  %v762_v38 = vadd.f32 %v759_v34, %v758_v32  ;;  %v772_v39 = vmul.f32 %v759_v34, %v759_v34  ;;  %v774_v40 = vmul.f32 %v761_v33, %v761_v33 }
 0x287   : > { %766 = vadd.xlane.f32.xlu1 %v765_v37  ;;  %763 = vadd.xlane.f32.xlu0 %v762_v38  ;;  %v775_v41 = vadd.f32 %v772_v39, %v771_v35  ;;  %v778_v42 = vadd.f32 %v774_v40, %v773_v36 }
 0x28b   : > { %776 = vadd.xlane.f32.xlu0 %v775_v41 }
 0x28f   : > { %779 = vadd.xlane.f32.xlu0 %v778_v42 }
 0x314   : > { %v767_v43 = vpop.xlane.xlu1 %766  ;;  %v764_v44 = vpop.xlane.xlu0 %763 }
 0x315   : > { %770 = vst.msk [vmem:[%s271_s30 + $0x8] sm:$0xff] %vm441_vm9, %v767_v43  ;;  %769 = vst.msk [vmem:[%s271_s30] sm:$0xff] %vm441_vm9, %v764_v44 }
 0x318   : > { %v777_v45 = vpop.xlane.xlu0 %776 }
 0x319   : > { %781 = vst.msk [vmem:[%s276_s9] sm:$0xff] %vm441_vm9, %v777_v45 }
 0x31c   : > { %v780_v46 = vpop.xlane.xlu0 %779 }
 0x31d   : > { %782 = vst.msk [vmem:[%s276_s9 + $0x8] sm:$0xff] %vm441_vm9, %v780_v46 }
 0x31e PF: > { %s17_s21 = sadd.s32 1, %s977_s21  }
 0x31f   : > { %p14_p4 = scmp.ge.s32.totalorder %s17_s21, 4  }
 0x321   :  { %16 = sbr.rel (!%p14_p4) target bundleno = 1 (0x1), region = 92 }

</bundles_post_ra>
